<compile_context>
chip_gen: v7x
topology: tpu7x:2x2x1
jax: 0.10.0
libtpu: 0.0.40
codegen_flags: <defaults>
</compile_context>

<pallas_src>
import jax
import jax.numpy as jnp
from jax.experimental import pallas as pl
from jax.experimental.pallas import tpu as pltpu

EPS = 1e-5
LANES = 128


def _round_up(x, m):
    return ((x + m - 1) // m) * m


def _pad_last(v, size):
    c = v.shape[-1]
    if c == size:
        return v
    return jnp.pad(v, [(0, 0)] * (v.ndim - 1) + [(0, size - c)])


# ----------------------------- Pallas kernels ------------------------------

def _make_conv_kernel(kh, kw, ho, wo, k, with_stats, with_bn_prologue):
    """Fused-im2col 'valid' conv over one spatially padded NHWC image.

    The kernel receives one whole (hin, win, k) image resident in VMEM and
    accumulates kh*kw per-tap GEMMs into an f32 accumulator, so no patch
    matrix ever exists in HBM.  Optional fused prologue applies the previous
    layer's BatchNorm + ReLU (the border mask re-applies the conv zero
    padding); optional epilogue emits per-image BatchNorm partial sums.
    """
    n_taps = kh * kw

    def kernel(*refs):
        x_ref, w_ref = refs[0], refs[1]
        pos = 2
        if with_bn_prologue:
            scale_ref, shift_ref, mask_ref = refs[pos], refs[pos + 1], refs[pos + 2]
            pos += 3
        o_ref = refs[pos]
        if with_stats:
            sum_ref, sq_ref = refs[pos + 1], refs[pos + 2]

        # Windowing is done in f32 (aligned 8-sublane layout); per-tap
        # matrices are cast to bf16 right before feeding the MXU.
        x = x_ref[...].astype(jnp.float32)                 # (hin, win, k)
        if with_bn_prologue:
            x = jnp.maximum(x * scale_ref[...] + shift_ref[...], 0.0)
            x = x * mask_ref[...]                          # re-zero border

        def tap(t):
            dy, dx = divmod(t, kw)
            win = x[dy:dy + ho, dx:dx + wo, :]             # static halo window
            return win.reshape(ho * wo, k).astype(jnp.bfloat16)

        acc = jnp.dot(tap(0), w_ref[0], preferred_element_type=jnp.float32)
        for t in range(1, n_taps):
            acc = acc + jnp.dot(tap(t), w_ref[t],
                                preferred_element_type=jnp.float32)

        o_ref[...] = acc.astype(o_ref.dtype)               # bf16 store
        if with_stats:
            # Per-image partials; summed over the tiny batch axis in JAX so
            # the batch grid axis stays fully "parallel".
            sum_ref[...] = jnp.sum(acc, axis=0, keepdims=True)
            sq_ref[...] = jnp.sum(acc * acc, axis=0, keepdims=True)

    return kernel


def fused_conv(x_img, w_taps, *, ho, wo, scale=None, shift=None, mask=None,
               with_stats=False, out_dtype=jnp.bfloat16):
    """x_img: (N, hin, win, K) bf16 spatially padded image (channels last).
    w_taps: (kh*kw, K, Cp) bf16 per-tap GEMM weights (Cp = 128-padded).

    Returns y of shape (N, ho*wo, Cp); with_stats also returns per-image
    (N, 1, Cp) f32 sum / sum-of-squares BatchNorm partials."""
    n, hin, win, k = x_img.shape
    n_taps, k2, cp = w_taps.shape
    kh = kw = int(round(n_taps ** 0.5))
    assert k == k2 and kh * kw == n_taps
    assert hin == ho + kh - 1 and win == wo + kw - 1

    with_prologue = scale is not None
    kernel = _make_conv_kernel(kh, kw, ho, wo, k, with_stats, with_prologue)

    in_specs = [
        pl.BlockSpec((None, hin, win, k), lambda i: (i, 0, 0, 0)),
        # Grid-constant resident weight block (no re-fetch across steps).
        pl.BlockSpec((n_taps, k, cp), lambda i: (0, 0, 0)),
    ]
    args = [x_img, w_taps]
    if with_prologue:
        in_specs += [pl.BlockSpec((1, cp), lambda i: (0, 0)),
                     pl.BlockSpec((1, cp), lambda i: (0, 0)),
                     pl.BlockSpec((hin, win, 1), lambda i: (0, 0, 0))]
        args += [scale, shift, mask]

    y_shape = jax.ShapeDtypeStruct((n, ho * wo, cp), out_dtype)
    y_spec = pl.BlockSpec((None, ho * wo, cp), lambda i: (i, 0, 0))
    if with_stats:
        stat_shape = jax.ShapeDtypeStruct((n, 1, cp), jnp.float32)
        stat_spec = pl.BlockSpec((None, 1, cp), lambda i: (i, 0, 0))
        out_shape = (y_shape, stat_shape, stat_shape)
        out_specs = (y_spec, stat_spec, stat_spec)
    else:
        out_shape = y_shape
        out_specs = y_spec

    return pl.pallas_call(
        kernel,
        out_shape=out_shape,
        grid_spec=pltpu.PrefetchScalarGridSpec(
            num_scalar_prefetch=0,
            grid=(n,),
            in_specs=in_specs,
            out_specs=out_specs),
        compiler_params=pltpu.CompilerParams(
            dimension_semantics=("parallel",)),
    )(*args)


def _bn_add_relu_kernel(y_ref, scale_ref, shift_ref, res_ref, o_ref):
    h = y_ref[...].astype(jnp.float32) * scale_ref[...] + shift_ref[...]
    o_ref[...] = jnp.maximum(res_ref[...].astype(jnp.float32) + h, 0.0)


def bn_add_relu(y, scale, shift, res):
    """relu(res + y*scale + shift); y/res are bf16, math & output are f32."""
    n, m, cp = y.shape
    row = pl.BlockSpec((None, m, cp), lambda i: (i, 0, 0))
    chan = pl.BlockSpec((1, cp), lambda i: (0, 0))
    return pl.pallas_call(
        _bn_add_relu_kernel,
        out_shape=jax.ShapeDtypeStruct((n, m, cp), jnp.float32),
        grid_spec=pltpu.PrefetchScalarGridSpec(
            num_scalar_prefetch=0,
            grid=(n,),
            in_specs=[row, chan, chan, row],
            out_specs=row),
        compiler_params=pltpu.CompilerParams(
            dimension_semantics=("parallel",)),
    )(y, scale, shift, res)


# ------------------------------- JAX glue ----------------------------------

def _space_to_depth_pad(x_nhwc):
    """Zero-pad by 1 and fold the 2x2 stride phases into channels, turning the
    stride-2 3x3 'scale' conv into a stride-1 2x2 conv for the fused kernel."""
    n, h, w, c = x_nhwc.shape
    assert h % 2 == 0 and w % 2 == 0
    ho, wo = h // 2, w // 2
    xp = jnp.pad(x_nhwc, ((0, 0), (1, 1), (1, 1), (0, 0)))
    xp = xp.reshape(n, ho + 1, 2, wo + 1, 2, c)
    xp = jnp.transpose(xp, (0, 1, 3, 2, 4, 5))
    return xp.reshape(n, ho + 1, wo + 1, 4 * c), ho, wo


def _scale_conv_weight(w_oihw, c_pad):
    """[O, I, 3, 3] stride-2 weight -> (4, 4*I, Cp) bf16 taps for the 2x2
    space-to-depth conv (tap = a*2+b, K ordered (row-phase, col-phase, ci))."""
    c_out, c_in = w_oihw.shape[:2]
    w = jnp.transpose(w_oihw, (2, 3, 1, 0))                    # (dy, dx, ci, co)
    w4 = jnp.zeros((4, 4, c_in, c_out), w.dtype).at[:3, :3].set(w)
    w4 = w4.reshape(2, 2, 2, 2, c_in, c_out)                   # (a, p, b, q, ci, co)
    w4 = jnp.transpose(w4, (0, 2, 1, 3, 4, 5)).reshape(4, 4 * c_in, c_out)
    return _pad_last(w4, c_pad).astype(jnp.bfloat16)


def _conv3_weight(w_oihw, c_pad):
    """[O, I, 3, 3] stride-1 weight -> (9, Cp, Cp) bf16 taps; both input and
    output channels zero-padded to the 128-lane boundary."""
    c_out, c_in = w_oihw.shape[:2]
    w = jnp.transpose(w_oihw, (2, 3, 1, 0)).reshape(9, c_in, c_out)
    w = jnp.pad(w, ((0, 0), (0, c_pad - c_in), (0, c_pad - c_out)))
    return w.astype(jnp.bfloat16)


def _bn_scale_shift(sum_n1c, sq_n1c, count, gamma, beta, c_pad):
    """Fold training-mode BatchNorm into one per-channel scale & shift."""
    s = jnp.sum(sum_n1c, axis=0)                  # (1, Cp)
    q = jnp.sum(sq_n1c, axis=0)
    mean = s / count
    var = jnp.maximum(q / count - mean * mean, 0.0)   # clamp cancellation
    g = _pad_last(gamma.reshape(1, -1).astype(jnp.float32), c_pad)
    b = _pad_last(beta.reshape(1, -1).astype(jnp.float32), c_pad)
    scale = g * jax.lax.rsqrt(var + EPS)
    shift = b - mean * scale
    return scale, shift


@jax.jit
def resblock_forward(x_nchw, params):
    c_out = params["w_scale"].shape[0]
    cp = _round_up(c_out, LANES)
    n = x_nchw.shape[0]

    # NCHW -> NHWC once at the boundary; everything downstream is channel-last
    # with channels kept zero-padded to Cp lanes (lane-dense stores, no
    # lane-sparse re-slicing between stages).
    x = jnp.transpose(x_nchw, (0, 2, 3, 1)).astype(jnp.bfloat16)

    # residual = scale(x): stride-2 3x3 conv as a 2x2 conv on the phase-folded
    # input (fused im2col, no patch matrix, no strided loads).
    x_s2d, ho, wo = _space_to_depth_pad(x)
    res = fused_conv(x_s2d, _scale_conv_weight(params["w_scale"], cp),
                     ho=ho, wo=wo)                        # (N, Ho*Wo, Cp) bf16

    m = ho * wo
    count = float(n * m)

    # Border mask re-applies the conv zero padding after the fused BN+ReLU
    # prologue of the consumer conv.
    mask = jnp.zeros((ho + 2, wo + 2, 1), jnp.float32).at[1:-1, 1:-1, :].set(1.0)

    def pad_img(y):   # cheap: pads the small un-amplified bf16 image only
        return jnp.pad(y.reshape(n, ho, wo, cp), ((0, 0), (1, 1), (1, 1), (0, 0)))

    # block conv1 (+ fused BatchNorm statistics in the epilogue)
    y1, s1, q1 = fused_conv(pad_img(res), _conv3_weight(params["w1"], cp),
                            ho=ho, wo=wo, with_stats=True)
    scale1, shift1 = _bn_scale_shift(s1, q1, count, params["gamma1"],
                                     params["beta1"], cp)

    # block conv2: BN1-apply + ReLU fused into this conv's prologue
    y2, s2, q2 = fused_conv(pad_img(y1), _conv3_weight(params["w2"], cp),
                            ho=ho, wo=wo, with_stats=True,
                            scale=scale1, shift=shift1, mask=mask)
    scale2, shift2 = _bn_scale_shift(s2, q2, count, params["gamma2"],
                                     params["beta2"], cp)

    # out = relu(residual + BN2(y2))
    out = bn_add_relu(y2, scale2, shift2, res)            # (N, Ho*Wo, Cp) f32
    out = out.reshape(n, ho, wo, cp)[..., :c_out]
    return jnp.transpose(out, (0, 3, 1, 2))               # NHWC -> NCHW


# --------------------------- pure-JAX reference ----------------------------

def resblock_reference(x_nchw, params):
    def conv(x, w, stride):
        return jax.lax.conv_general_dilated(
            x, w, (stride, stride), ((1, 1), (1, 1)),
            dimension_numbers=("NCHW", "OIHW", "NCHW"))

    def bn(y, gamma, beta):
        mean = jnp.mean(y, axis=(0, 2, 3), keepdims=True)
        var = jnp.mean(y * y, axis=(0, 2, 3), keepdims=True) - mean * mean
        g = gamma.reshape(1, -1, 1, 1)
        b = beta.reshape(1, -1, 1, 1)
        return (y - mean) * jax.lax.rsqrt(var + EPS) * g + b

    res = conv(x_nchw, params["w_scale"], 2)
    h = jax.nn.relu(bn(conv(res, params["w1"], 1),
                       params["gamma1"], params["beta1"]))
    h = bn(conv(h, params["w2"], 1), params["gamma2"], params["beta2"])
    return jax.nn.relu(res + h)


# --------------------------------- main ------------------------------------

if __name__ == "__main__":
    in_nc, out_nc = 4, 8
    N, H, W = 2, 16, 16

    key = jax.random.PRNGKey(0)
    k_x, k_ws, k_w1, k_w2 = jax.random.split(key, 4)

    x = jax.random.normal(k_x, (N, in_nc, H, W), dtype=jnp.float32)

    params = {
        # PyTorch conv weight layout [out, in, kh, kw]
        "w_scale": 0.1 * jax.random.normal(k_ws, (out_nc, in_nc, 3, 3), jnp.float32),
        "w1": 0.1 * jax.random.normal(k_w1, (out_nc, out_nc, 3, 3), jnp.float32),
        "w2": 0.1 * jax.random.normal(k_w2, (out_nc, out_nc, 3, 3), jnp.float32),
        # BatchNorm affine params (PyTorch default init: weight=1, bias=0)
        "gamma1": jnp.ones((out_nc,), jnp.float32),
        "beta1": jnp.zeros((out_nc,), jnp.float32),
        "gamma2": jnp.ones((out_nc,), jnp.float32),
        "beta2": jnp.zeros((out_nc,), jnp.float32),
    }

    out = jax.block_until_ready(resblock_forward(x, params))
    ref = jax.block_until_ready(resblock_reference(x, params))

    assert out.shape == (N, out_nc, H // 2, W // 2), out.shape
    # bf16 MXU feeds + bf16 intermediate storage give ~1% relative deviation
    # vs the all-f32 reference; the two chained BatchNorm normalizations
    # amplify that to a few e-2 absolute in the worst elements.
    max_err = float(jnp.max(jnp.abs(out - ref)))
    assert jnp.allclose(out, ref, atol=8e-2, rtol=8e-2), max_err

    print("KERNEL_OK")
</pallas_src>

<mosaic_0001>
module attributes {stable_mosaic.version = 11 : i64} {
  func.func @kernel(%arg0: i32, %arg1: memref<1x9x9x16xbf16, #tpu.memory_space<vmem>>, %arg2: memref<4x16x128xbf16, #tpu.memory_space<vmem>>, %arg3: memref<1x64x128xbf16, #tpu.memory_space<vmem>>) attributes {dimension_semantics = [#tpu.dimension_semantics<parallel>], iteration_bounds = array<i64: 2>, scalar_prefetch = 0 : i64, scratch_operands = 0 : i64, tpu.core_type = #tpu.core_type<tc>, window_params = [{transform_indices = @transform_0, window_bounds = array<i64: 1, 9, 9, 16>}, {pipeline_mode = #tpu.pipeline_mode<synchronous>, transform_indices = @transform_1, window_bounds = array<i64: 4, 16, 128>}, {transform_indices = @transform_2, window_bounds = array<i64: 1, 64, 128>}]} {
    %c0 = arith.constant 0 : index
    %c0_0 = arith.constant 0 : index
    %c0_1 = arith.constant 0 : index
    %c0_2 = arith.constant 0 : index
    %0 = vector.load %arg1[%c0, %c0_0, %c0_1, %c0_2] : memref<1x9x9x16xbf16, #tpu.memory_space<vmem>>, vector<1x9x9x16xbf16>
    %1 = vector.shape_cast %0 : vector<1x9x9x16xbf16> to vector<9x9x16xbf16>
    %2 = arith.extf %1 : vector<9x9x16xbf16> to vector<9x9x16xf32>
    %3 = vector.extract_strided_slice %2 {offsets = [0, 0, 0], sizes = [8, 8, 16], strides = [1, 1, 1]} : vector<9x9x16xf32> to vector<8x8x16xf32>
    %4 = vector.shape_cast %3 : vector<8x8x16xf32> to vector<64x16xf32>
    %5 = arith.truncf %4 : vector<64x16xf32> to vector<64x16xbf16>
    %c0_3 = arith.constant 0 : index
    %c0_4 = arith.constant 0 : index
    %c0_5 = arith.constant 0 : index
    %6 = vector.load %arg2[%c0_3, %c0_4, %c0_5] : memref<4x16x128xbf16, #tpu.memory_space<vmem>>, vector<1x16x128xbf16>
    %7 = vector.shape_cast %6 : vector<1x16x128xbf16> to vector<16x128xbf16>
    %cst = arith.constant dense<0.000000e+00> : vector<64x128xf32>
    %8 = tpu.matmul %5, %7, %cst {dimension_numbers = #tpu.dot_dimension_numbers<[1], [0], [0], [1], [0, 0, 1, 1], [], []>} : vector<64x16xbf16>, vector<16x128xbf16>, vector<64x128xf32> -> vector<64x128xf32>
    %9 = vector.extract_strided_slice %2 {offsets = [0, 1, 0], sizes = [8, 8, 16], strides = [1, 1, 1]} : vector<9x9x16xf32> to vector<8x8x16xf32>
    %10 = vector.shape_cast %9 : vector<8x8x16xf32> to vector<64x16xf32>
    %11 = arith.truncf %10 : vector<64x16xf32> to vector<64x16xbf16>
    %c1 = arith.constant 1 : index
    %c0_6 = arith.constant 0 : index
    %c0_7 = arith.constant 0 : index
    %12 = vector.load %arg2[%c1, %c0_6, %c0_7] : memref<4x16x128xbf16, #tpu.memory_space<vmem>>, vector<1x16x128xbf16>
    %13 = vector.shape_cast %12 : vector<1x16x128xbf16> to vector<16x128xbf16>
    %cst_8 = arith.constant dense<0.000000e+00> : vector<64x128xf32>
    %14 = tpu.matmul %11, %13, %cst_8 {dimension_numbers = #tpu.dot_dimension_numbers<[1], [0], [0], [1], [0, 0, 1, 1], [], []>} : vector<64x16xbf16>, vector<16x128xbf16>, vector<64x128xf32> -> vector<64x128xf32>
    %15 = arith.addf %8, %14 : vector<64x128xf32>
    %16 = vector.extract_strided_slice %2 {offsets = [1, 0, 0], sizes = [8, 8, 16], strides = [1, 1, 1]} : vector<9x9x16xf32> to vector<8x8x16xf32>
    %17 = vector.shape_cast %16 : vector<8x8x16xf32> to vector<64x16xf32>
    %18 = arith.truncf %17 : vector<64x16xf32> to vector<64x16xbf16>
    %c2 = arith.constant 2 : index
    %c0_9 = arith.constant 0 : index
    %c0_10 = arith.constant 0 : index
    %19 = vector.load %arg2[%c2, %c0_9, %c0_10] : memref<4x16x128xbf16, #tpu.memory_space<vmem>>, vector<1x16x128xbf16>
    %20 = vector.shape_cast %19 : vector<1x16x128xbf16> to vector<16x128xbf16>
    %cst_11 = arith.constant dense<0.000000e+00> : vector<64x128xf32>
    %21 = tpu.matmul %18, %20, %cst_11 {dimension_numbers = #tpu.dot_dimension_numbers<[1], [0], [0], [1], [0, 0, 1, 1], [], []>} : vector<64x16xbf16>, vector<16x128xbf16>, vector<64x128xf32> -> vector<64x128xf32>
    %22 = arith.addf %15, %21 : vector<64x128xf32>
    %23 = vector.extract_strided_slice %2 {offsets = [1, 1, 0], sizes = [8, 8, 16], strides = [1, 1, 1]} : vector<9x9x16xf32> to vector<8x8x16xf32>
    %24 = vector.shape_cast %23 : vector<8x8x16xf32> to vector<64x16xf32>
    %25 = arith.truncf %24 : vector<64x16xf32> to vector<64x16xbf16>
    %c3 = arith.constant 3 : index
    %c0_12 = arith.constant 0 : index
    %c0_13 = arith.constant 0 : index
    %26 = vector.load %arg2[%c3, %c0_12, %c0_13] : memref<4x16x128xbf16, #tpu.memory_space<vmem>>, vector<1x16x128xbf16>
    %27 = vector.shape_cast %26 : vector<1x16x128xbf16> to vector<16x128xbf16>
    %cst_14 = arith.constant dense<0.000000e+00> : vector<64x128xf32>
    %28 = tpu.matmul %25, %27, %cst_14 {dimension_numbers = #tpu.dot_dimension_numbers<[1], [0], [0], [1], [0, 0, 1, 1], [], []>} : vector<64x16xbf16>, vector<16x128xbf16>, vector<64x128xf32> -> vector<64x128xf32>
    %29 = arith.addf %22, %28 : vector<64x128xf32>
    %30 = arith.truncf %29 : vector<64x128xf32> to vector<64x128xbf16>
    %c0_15 = arith.constant 0 : index
    %c0_16 = arith.constant 0 : index
    %c0_17 = arith.constant 0 : index
    %31 = vector.load %arg3[%c0_15, %c0_16, %c0_17] : memref<1x64x128xbf16, #tpu.memory_space<vmem>>, vector<1x64x128xbf16>
    %32 = vector.shape_cast %31 : vector<1x64x128xbf16> to vector<64x128xbf16>
    %33 = vector.shape_cast %30 : vector<64x128xbf16> to vector<1x64x128xbf16>
    tpu.vector_store %arg3[%c0_15, %c0_16, %c0_17], %33 {strides = array<i32>} : memref<1x64x128xbf16, #tpu.memory_space<vmem>>, vector<1x64x128xbf16>,
    return
  }
  func.func @transform_0(%arg0: i32) -> (i32, i32, i32, i32) {
    %c0_i32 = arith.constant 0 : i32
    %c0_i32_0 = arith.constant 0 : i32
    %c0_i32_1 = arith.constant 0 : i32
    %c0_i32_2 = arith.constant 0 : i32
    return %arg0, %c0_i32, %c0_i32_0, %c0_i32_1 : i32, i32, i32, i32
  }
  func.func @transform_1(%arg0: i32) -> (i32, i32, i32) {
    %c0_i32 = arith.constant 0 : i32
    %c0_i32_0 = arith.constant 0 : i32
    %c0_i32_1 = arith.constant 0 : i32
    %c0_i32_2 = arith.constant 0 : i32
    return %c0_i32, %c0_i32_0, %c0_i32_1 : i32, i32, i32
  }
  func.func @transform_2(%arg0: i32) -> (i32, i32, i32) {
    %c0_i32 = arith.constant 0 : i32
    %c0_i32_0 = arith.constant 0 : i32
    %c0_i32_1 = arith.constant 0 : i32
    return %arg0, %c0_i32, %c0_i32_0 : i32, i32, i32
  }
}

module attributes {stable_mosaic.version = 11 : i64} {
  func.func @kernel(%arg0: i32, %arg1: memref<1x10x10x128xbf16, #tpu.memory_space<vmem>>, %arg2: memref<9x128x128xbf16, #tpu.memory_space<vmem>>, %arg3: memref<1x64x128xbf16, #tpu.memory_space<vmem>>, %arg4: memref<1x1x128xf32, #tpu.memory_space<vmem>>, %arg5: memref<1x1x128xf32, #tpu.memory_space<vmem>>) attributes {dimension_semantics = [#tpu.dimension_semantics<parallel>], iteration_bounds = array<i64: 2>, scalar_prefetch = 0 : i64, scratch_operands = 0 : i64, tpu.core_type = #tpu.core_type<tc>, window_params = [{transform_indices = @transform_0, window_bounds = array<i64: 1, 10, 10, 128>}, {pipeline_mode = #tpu.pipeline_mode<synchronous>, transform_indices = @transform_1, window_bounds = array<i64: 9, 128, 128>}, {transform_indices = @transform_2, window_bounds = array<i64: 1, 64, 128>}, {transform_indices = @transform_3, window_bounds = array<i64: 1, 1, 128>}, {transform_indices = @transform_4, window_bounds = array<i64: 1, 1, 128>}]} {
    %c0 = arith.constant 0 : index
    %c0_0 = arith.constant 0 : index
    %c0_1 = arith.constant 0 : index
    %c0_2 = arith.constant 0 : index
    %0 = vector.load %arg1[%c0, %c0_0, %c0_1, %c0_2] : memref<1x10x10x128xbf16, #tpu.memory_space<vmem>>, vector<1x10x10x128xbf16>
    %1 = vector.shape_cast %0 : vector<1x10x10x128xbf16> to vector<10x10x128xbf16>
    %2 = arith.extf %1 : vector<10x10x128xbf16> to vector<10x10x128xf32>
    %3 = vector.extract_strided_slice %2 {offsets = [0, 0, 0], sizes = [8, 8, 128], strides = [1, 1, 1]} : vector<10x10x128xf32> to vector<8x8x128xf32>
    %4 = vector.shape_cast %3 : vector<8x8x128xf32> to vector<64x128xf32>
    %5 = arith.truncf %4 : vector<64x128xf32> to vector<64x128xbf16>
    %c0_3 = arith.constant 0 : index
    %c0_4 = arith.constant 0 : index
    %c0_5 = arith.constant 0 : index
    %6 = vector.load %arg2[%c0_3, %c0_4, %c0_5] : memref<9x128x128xbf16, #tpu.memory_space<vmem>>, vector<1x128x128xbf16>
    %7 = vector.shape_cast %6 : vector<1x128x128xbf16> to vector<128x128xbf16>
    %cst = arith.constant dense<0.000000e+00> : vector<64x128xf32>
    %8 = tpu.matmul %5, %7, %cst {dimension_numbers = #tpu.dot_dimension_numbers<[1], [0], [0], [1], [0, 0, 1, 1], [], []>} : vector<64x128xbf16>, vector<128x128xbf16>, vector<64x128xf32> -> vector<64x128xf32>
    %9 = vector.extract_strided_slice %2 {offsets = [0, 1, 0], sizes = [8, 8, 128], strides = [1, 1, 1]} : vector<10x10x128xf32> to vector<8x8x128xf32>
    %10 = vector.shape_cast %9 : vector<8x8x128xf32> to vector<64x128xf32>
    %11 = arith.truncf %10 : vector<64x128xf32> to vector<64x128xbf16>
    %c1 = arith.constant 1 : index
    %c0_6 = arith.constant 0 : index
    %c0_7 = arith.constant 0 : index
    %12 = vector.load %arg2[%c1, %c0_6, %c0_7] : memref<9x128x128xbf16, #tpu.memory_space<vmem>>, vector<1x128x128xbf16>
    %13 = vector.shape_cast %12 : vector<1x128x128xbf16> to vector<128x128xbf16>
    %cst_8 = arith.constant dense<0.000000e+00> : vector<64x128xf32>
    %14 = tpu.matmul %11, %13, %cst_8 {dimension_numbers = #tpu.dot_dimension_numbers<[1], [0], [0], [1], [0, 0, 1, 1], [], []>} : vector<64x128xbf16>, vector<128x128xbf16>, vector<64x128xf32> -> vector<64x128xf32>
    %15 = arith.addf %8, %14 : vector<64x128xf32>
    %16 = vector.extract_strided_slice %2 {offsets = [0, 2, 0], sizes = [8, 8, 128], strides = [1, 1, 1]} : vector<10x10x128xf32> to vector<8x8x128xf32>
    %17 = vector.shape_cast %16 : vector<8x8x128xf32> to vector<64x128xf32>
    %18 = arith.truncf %17 : vector<64x128xf32> to vector<64x128xbf16>
    %c2 = arith.constant 2 : index
    %c0_9 = arith.constant 0 : index
    %c0_10 = arith.constant 0 : index
    %19 = vector.load %arg2[%c2, %c0_9, %c0_10] : memref<9x128x128xbf16, #tpu.memory_space<vmem>>, vector<1x128x128xbf16>
    %20 = vector.shape_cast %19 : vector<1x128x128xbf16> to vector<128x128xbf16>
    %cst_11 = arith.constant dense<0.000000e+00> : vector<64x128xf32>
    %21 = tpu.matmul %18, %20, %cst_11 {dimension_numbers = #tpu.dot_dimension_numbers<[1], [0], [0], [1], [0, 0, 1, 1], [], []>} : vector<64x128xbf16>, vector<128x128xbf16>, vector<64x128xf32> -> vector<64x128xf32>
    %22 = arith.addf %15, %21 : vector<64x128xf32>
    %23 = vector.extract_strided_slice %2 {offsets = [1, 0, 0], sizes = [8, 8, 128], strides = [1, 1, 1]} : vector<10x10x128xf32> to vector<8x8x128xf32>
    %24 = vector.shape_cast %23 : vector<8x8x128xf32> to vector<64x128xf32>
    %25 = arith.truncf %24 : vector<64x128xf32> to vector<64x128xbf16>
    %c3 = arith.constant 3 : index
    %c0_12 = arith.constant 0 : index
    %c0_13 = arith.constant 0 : index
    %26 = vector.load %arg2[%c3, %c0_12, %c0_13] : memref<9x128x128xbf16, #tpu.memory_space<vmem>>, vector<1x128x128xbf16>
    %27 = vector.shape_cast %26 : vector<1x128x128xbf16> to vector<128x128xbf16>
    %cst_14 = arith.constant dense<0.000000e+00> : vector<64x128xf32>
    %28 = tpu.matmul %25, %27, %cst_14 {dimension_numbers = #tpu.dot_dimension_numbers<[1], [0], [0], [1], [0, 0, 1, 1], [], []>} : vector<64x128xbf16>, vector<128x128xbf16>, vector<64x128xf32> -> vector<64x128xf32>
    %29 = arith.addf %22, %28 : vector<64x128xf32>
    %30 = vector.extract_strided_slice %2 {offsets = [1, 1, 0], sizes = [8, 8, 128], strides = [1, 1, 1]} : vector<10x10x128xf32> to vector<8x8x128xf32>
    %31 = vector.shape_cast %30 : vector<8x8x128xf32> to vector<64x128xf32>
    %32 = arith.truncf %31 : vector<64x128xf32> to vector<64x128xbf16>
    %c4 = arith.constant 4 : index
    %c0_15 = arith.constant 0 : index
    %c0_16 = arith.constant 0 : index
    %33 = vector.load %arg2[%c4, %c0_15, %c0_16] : memref<9x128x128xbf16, #tpu.memory_space<vmem>>, vector<1x128x128xbf16>
    %34 = vector.shape_cast %33 : vector<1x128x128xbf16> to vector<128x128xbf16>
    %cst_17 = arith.constant dense<0.000000e+00> : vector<64x128xf32>
    %35 = tpu.matmul %32, %34, %cst_17 {dimension_numbers = #tpu.dot_dimension_numbers<[1], [0], [0], [1], [0, 0, 1, 1], [], []>} : vector<64x128xbf16>, vector<128x128xbf16>, vector<64x128xf32> -> vector<64x128xf32>
    %36 = arith.addf %29, %35 : vector<64x128xf32>
    %37 = vector.extract_strided_slice %2 {offsets = [1, 2, 0], sizes = [8, 8, 128], strides = [1, 1, 1]} : vector<10x10x128xf32> to vector<8x8x128xf32>
    %38 = vector.shape_cast %37 : vector<8x8x128xf32> to vector<64x128xf32>
    %39 = arith.truncf %38 : vector<64x128xf32> to vector<64x128xbf16>
    %c5 = arith.constant 5 : index
    %c0_18 = arith.constant 0 : index
    %c0_19 = arith.constant 0 : index
    %40 = vector.load %arg2[%c5, %c0_18, %c0_19] : memref<9x128x128xbf16, #tpu.memory_space<vmem>>, vector<1x128x128xbf16>
    %41 = vector.shape_cast %40 : vector<1x128x128xbf16> to vector<128x128xbf16>
    %cst_20 = arith.constant dense<0.000000e+00> : vector<64x128xf32>
    %42 = tpu.matmul %39, %41, %cst_20 {dimension_numbers = #tpu.dot_dimension_numbers<[1], [0], [0], [1], [0, 0, 1, 1], [], []>} : vector<64x128xbf16>, vector<128x128xbf16>, vector<64x128xf32> -> vector<64x128xf32>
    %43 = arith.addf %36, %42 : vector<64x128xf32>
    %44 = vector.extract_strided_slice %2 {offsets = [2, 0, 0], sizes = [8, 8, 128], strides = [1, 1, 1]} : vector<10x10x128xf32> to vector<8x8x128xf32>
    %45 = vector.shape_cast %44 : vector<8x8x128xf32> to vector<64x128xf32>
    %46 = arith.truncf %45 : vector<64x128xf32> to vector<64x128xbf16>
    %c6 = arith.constant 6 : index
    %c0_21 = arith.constant 0 : index
    %c0_22 = arith.constant 0 : index
    %47 = vector.load %arg2[%c6, %c0_21, %c0_22] : memref<9x128x128xbf16, #tpu.memory_space<vmem>>, vector<1x128x128xbf16>
    %48 = vector.shape_cast %47 : vector<1x128x128xbf16> to vector<128x128xbf16>
    %cst_23 = arith.constant dense<0.000000e+00> : vector<64x128xf32>
    %49 = tpu.matmul %46, %48, %cst_23 {dimension_numbers = #tpu.dot_dimension_numbers<[1], [0], [0], [1], [0, 0, 1, 1], [], []>} : vector<64x128xbf16>, vector<128x128xbf16>, vector<64x128xf32> -> vector<64x128xf32>
    %50 = arith.addf %43, %49 : vector<64x128xf32>
    %51 = vector.extract_strided_slice %2 {offsets = [2, 1, 0], sizes = [8, 8, 128], strides = [1, 1, 1]} : vector<10x10x128xf32> to vector<8x8x128xf32>
    %52 = vector.shape_cast %51 : vector<8x8x128xf32> to vector<64x128xf32>
    %53 = arith.truncf %52 : vector<64x128xf32> to vector<64x128xbf16>
    %c7 = arith.constant 7 : index
    %c0_24 = arith.constant 0 : index
    %c0_25 = arith.constant 0 : index
    %54 = vector.load %arg2[%c7, %c0_24, %c0_25] : memref<9x128x128xbf16, #tpu.memory_space<vmem>>, vector<1x128x128xbf16>
    %55 = vector.shape_cast %54 : vector<1x128x128xbf16> to vector<128x128xbf16>
    %cst_26 = arith.constant dense<0.000000e+00> : vector<64x128xf32>
    %56 = tpu.matmul %53, %55, %cst_26 {dimension_numbers = #tpu.dot_dimension_numbers<[1], [0], [0], [1], [0, 0, 1, 1], [], []>} : vector<64x128xbf16>, vector<128x128xbf16>, vector<64x128xf32> -> vector<64x128xf32>
    %57 = arith.addf %50, %56 : vector<64x128xf32>
    %58 = vector.extract_strided_slice %2 {offsets = [2, 2, 0], sizes = [8, 8, 128], strides = [1, 1, 1]} : vector<10x10x128xf32> to vector<8x8x128xf32>
    %59 = vector.shape_cast %58 : vector<8x8x128xf32> to vector<64x128xf32>
    %60 = arith.truncf %59 : vector<64x128xf32> to vector<64x128xbf16>
    %c8 = arith.constant 8 : index
    %c0_27 = arith.constant 0 : index
    %c0_28 = arith.constant 0 : index
    %61 = vector.load %arg2[%c8, %c0_27, %c0_28] : memref<9x128x128xbf16, #tpu.memory_space<vmem>>, vector<1x128x128xbf16>
    %62 = vector.shape_cast %61 : vector<1x128x128xbf16> to vector<128x128xbf16>
    %cst_29 = arith.constant dense<0.000000e+00> : vector<64x128xf32>
    %63 = tpu.matmul %60, %62, %cst_29 {dimension_numbers = #tpu.dot_dimension_numbers<[1], [0], [0], [1], [0, 0, 1, 1], [], []>} : vector<64x128xbf16>, vector<128x128xbf16>, vector<64x128xf32> -> vector<64x128xf32>
    %64 = arith.addf %57, %63 : vector<64x128xf32>
    %65 = arith.truncf %64 : vector<64x128xf32> to vector<64x128xbf16>
    %c0_30 = arith.constant 0 : index
    %c0_31 = arith.constant 0 : index
    %c0_32 = arith.constant 0 : index
    %66 = vector.load %arg3[%c0_30, %c0_31, %c0_32] : memref<1x64x128xbf16, #tpu.memory_space<vmem>>, vector<1x64x128xbf16>
    %67 = vector.shape_cast %66 : vector<1x64x128xbf16> to vector<64x128xbf16>
    %68 = vector.shape_cast %65 : vector<64x128xbf16> to vector<1x64x128xbf16>
    tpu.vector_store %arg3[%c0_30, %c0_31, %c0_32], %68 {strides = array<i32>} : memref<1x64x128xbf16, #tpu.memory_space<vmem>>, vector<1x64x128xbf16>,
    %cst_33 = arith.constant dense<0.000000e+00> : vector<128xf32>
    %69 = vector.multi_reduction <add>, %64, %cst_33 [0] : vector<64x128xf32> to vector<128xf32>
    %70 = vector.shape_cast %69 : vector<128xf32> to vector<1x128xf32>
    %c0_34 = arith.constant 0 : index
    %c0_35 = arith.constant 0 : index
    %c0_36 = arith.constant 0 : index
    %71 = vector.load %arg4[%c0_34, %c0_35, %c0_36] : memref<1x1x128xf32, #tpu.memory_space<vmem>>, vector<1x1x128xf32>
    %72 = vector.shape_cast %71 : vector<1x1x128xf32> to vector<1x128xf32>
    %73 = vector.shape_cast %70 : vector<1x128xf32> to vector<1x1x128xf32>
    tpu.vector_store %arg4[%c0_34, %c0_35, %c0_36], %73 {strides = array<i32>} : memref<1x1x128xf32, #tpu.memory_space<vmem>>, vector<1x1x128xf32>,
    %74 = arith.mulf %64, %64 : vector<64x128xf32>
    %cst_37 = arith.constant dense<0.000000e+00> : vector<128xf32>
    %75 = vector.multi_reduction <add>, %74, %cst_37 [0] : vector<64x128xf32> to vector<128xf32>
    %76 = vector.shape_cast %75 : vector<128xf32> to vector<1x128xf32>
    %c0_38 = arith.constant 0 : index
    %c0_39 = arith.constant 0 : index
    %c0_40 = arith.constant 0 : index
    %77 = vector.load %arg5[%c0_38, %c0_39, %c0_40] : memref<1x1x128xf32, #tpu.memory_space<vmem>>, vector<1x1x128xf32>
    %78 = vector.shape_cast %77 : vector<1x1x128xf32> to vector<1x128xf32>
    %79 = vector.shape_cast %76 : vector<1x128xf32> to vector<1x1x128xf32>
    tpu.vector_store %arg5[%c0_38, %c0_39, %c0_40], %79 {strides = array<i32>} : memref<1x1x128xf32, #tpu.memory_space<vmem>>, vector<1x1x128xf32>,
    return
  }
  func.func @transform_0(%arg0: i32) -> (i32, i32, i32, i32) {
    %c0_i32 = arith.constant 0 : i32
    %c0_i32_0 = arith.constant 0 : i32
    %c0_i32_1 = arith.constant 0 : i32
    %c0_i32_2 = arith.constant 0 : i32
    return %arg0, %c0_i32, %c0_i32_0, %c0_i32_1 : i32, i32, i32, i32
  }
  func.func @transform_1(%arg0: i32) -> (i32, i32, i32) {
    %c0_i32 = arith.constant 0 : i32
    %c0_i32_0 = arith.constant 0 : i32
    %c0_i32_1 = arith.constant 0 : i32
    %c0_i32_2 = arith.constant 0 : i32
    return %c0_i32, %c0_i32_0, %c0_i32_1 : i32, i32, i32
  }
  func.func @transform_2(%arg0: i32) -> (i32, i32, i32) {
    %c0_i32 = arith.constant 0 : i32
    %c0_i32_0 = arith.constant 0 : i32
    %c0_i32_1 = arith.constant 0 : i32
    return %arg0, %c0_i32, %c0_i32_0 : i32, i32, i32
  }
  func.func @transform_3(%arg0: i32) -> (i32, i32, i32) {
    %c0_i32 = arith.constant 0 : i32
    %c0_i32_0 = arith.constant 0 : i32
    %c0_i32_1 = arith.constant 0 : i32
    return %arg0, %c0_i32, %c0_i32_0 : i32, i32, i32
  }
  func.func @transform_4(%arg0: i32) -> (i32, i32, i32) {
    %c0_i32 = arith.constant 0 : i32
    %c0_i32_0 = arith.constant 0 : i32
    %c0_i32_1 = arith.constant 0 : i32
    return %arg0, %c0_i32, %c0_i32_0 : i32, i32, i32
  }
}

module attributes {stable_mosaic.version = 11 : i64} {
  func.func @kernel(%arg0: i32, %arg1: memref<1x10x10x128xbf16, #tpu.memory_space<vmem>>, %arg2: memref<9x128x128xbf16, #tpu.memory_space<vmem>>, %arg3: memref<1x128xf32, #tpu.memory_space<vmem>>, %arg4: memref<1x128xf32, #tpu.memory_space<vmem>>, %arg5: memref<10x10x1xf32, #tpu.memory_space<vmem>>, %arg6: memref<1x64x128xbf16, #tpu.memory_space<vmem>>, %arg7: memref<1x1x128xf32, #tpu.memory_space<vmem>>, %arg8: memref<1x1x128xf32, #tpu.memory_space<vmem>>) attributes {dimension_semantics = [#tpu.dimension_semantics<parallel>], iteration_bounds = array<i64: 2>, scalar_prefetch = 0 : i64, scratch_operands = 0 : i64, tpu.core_type = #tpu.core_type<tc>, window_params = [{transform_indices = @transform_0, window_bounds = array<i64: 1, 10, 10, 128>}, {pipeline_mode = #tpu.pipeline_mode<synchronous>, transform_indices = @transform_1, window_bounds = array<i64: 9, 128, 128>}, {pipeline_mode = #tpu.pipeline_mode<synchronous>, transform_indices = @transform_2, window_bounds = array<i64: 1, 128>}, {pipeline_mode = #tpu.pipeline_mode<synchronous>, transform_indices = @transform_3, window_bounds = array<i64: 1, 128>}, {pipeline_mode = #tpu.pipeline_mode<synchronous>, transform_indices = @transform_4, window_bounds = array<i64: 10, 10, 1>}, {transform_indices = @transform_5, window_bounds = array<i64: 1, 64, 128>}, {transform_indices = @transform_6, window_bounds = array<i64: 1, 1, 128>}, {transform_indices = @transform_7, window_bounds = array<i64: 1, 1, 128>}]} {
    %c0 = arith.constant 0 : index
    %c0_0 = arith.constant 0 : index
    %c0_1 = arith.constant 0 : index
    %c0_2 = arith.constant 0 : index
    %0 = vector.load %arg1[%c0, %c0_0, %c0_1, %c0_2] : memref<1x10x10x128xbf16, #tpu.memory_space<vmem>>, vector<1x10x10x128xbf16>
    %1 = vector.shape_cast %0 : vector<1x10x10x128xbf16> to vector<10x10x128xbf16>
    %2 = arith.extf %1 : vector<10x10x128xbf16> to vector<10x10x128xf32>
    %c0_3 = arith.constant 0 : index
    %c0_4 = arith.constant 0 : index
    %3 = vector.load %arg3[%c0_3, %c0_4] : memref<1x128xf32, #tpu.memory_space<vmem>>, vector<1x128xf32>
    %4 = vector.shape_cast %3 : vector<1x128xf32> to vector<1x1x128xf32>
    %5 = vector.broadcast %4 : vector<1x1x128xf32> to vector<10x10x128xf32>
    %6 = arith.mulf %2, %5 : vector<10x10x128xf32>
    %c0_5 = arith.constant 0 : index
    %c0_6 = arith.constant 0 : index
    %7 = vector.load %arg4[%c0_5, %c0_6] : memref<1x128xf32, #tpu.memory_space<vmem>>, vector<1x128xf32>
    %8 = vector.shape_cast %7 : vector<1x128xf32> to vector<1x1x128xf32>
    %9 = vector.broadcast %8 : vector<1x1x128xf32> to vector<10x10x128xf32>
    %10 = arith.addf %6, %9 : vector<10x10x128xf32>
    %cst = arith.constant 0.000000e+00 : f32
    %11 = vector.broadcast %cst : f32 to vector<10x10x128xf32>
    %12 = arith.maximumf %10, %11 : vector<10x10x128xf32>
    %c0_7 = arith.constant 0 : index
    %c0_8 = arith.constant 0 : index
    %c0_9 = arith.constant 0 : index
    %13 = vector.load %arg5[%c0_7, %c0_8, %c0_9] : memref<10x10x1xf32, #tpu.memory_space<vmem>>, vector<10x10x1xf32>
    %14 = vector.broadcast %13 : vector<10x10x1xf32> to vector<10x10x128xf32>
    %15 = arith.mulf %12, %14 : vector<10x10x128xf32>
    %16 = vector.extract_strided_slice %15 {offsets = [0, 0, 0], sizes = [8, 8, 128], strides = [1, 1, 1]} : vector<10x10x128xf32> to vector<8x8x128xf32>
    %17 = vector.shape_cast %16 : vector<8x8x128xf32> to vector<64x128xf32>
    %18 = arith.truncf %17 : vector<64x128xf32> to vector<64x128xbf16>
    %c0_10 = arith.constant 0 : index
    %c0_11 = arith.constant 0 : index
    %c0_12 = arith.constant 0 : index
    %19 = vector.load %arg2[%c0_10, %c0_11, %c0_12] : memref<9x128x128xbf16, #tpu.memory_space<vmem>>, vector<1x128x128xbf16>
    %20 = vector.shape_cast %19 : vector<1x128x128xbf16> to vector<128x128xbf16>
    %cst_13 = arith.constant dense<0.000000e+00> : vector<64x128xf32>
    %21 = tpu.matmul %18, %20, %cst_13 {dimension_numbers = #tpu.dot_dimension_numbers<[1], [0], [0], [1], [0, 0, 1, 1], [], []>} : vector<64x128xbf16>, vector<128x128xbf16>, vector<64x128xf32> -> vector<64x128xf32>
    %22 = vector.extract_strided_slice %15 {offsets = [0, 1, 0], sizes = [8, 8, 128], strides = [1, 1, 1]} : vector<10x10x128xf32> to vector<8x8x128xf32>
    %23 = vector.shape_cast %22 : vector<8x8x128xf32> to vector<64x128xf32>
    %24 = arith.truncf %23 : vector<64x128xf32> to vector<64x128xbf16>
    %c1 = arith.constant 1 : index
    %c0_14 = arith.constant 0 : index
    %c0_15 = arith.constant 0 : index
    %25 = vector.load %arg2[%c1, %c0_14, %c0_15] : memref<9x128x128xbf16, #tpu.memory_space<vmem>>, vector<1x128x128xbf16>
    %26 = vector.shape_cast %25 : vector<1x128x128xbf16> to vector<128x128xbf16>
    %cst_16 = arith.constant dense<0.000000e+00> : vector<64x128xf32>
    %27 = tpu.matmul %24, %26, %cst_16 {dimension_numbers = #tpu.dot_dimension_numbers<[1], [0], [0], [1], [0, 0, 1, 1], [], []>} : vector<64x128xbf16>, vector<128x128xbf16>, vector<64x128xf32> -> vector<64x128xf32>
    %28 = arith.addf %21, %27 : vector<64x128xf32>
    %29 = vector.extract_strided_slice %15 {offsets = [0, 2, 0], sizes = [8, 8, 128], strides = [1, 1, 1]} : vector<10x10x128xf32> to vector<8x8x128xf32>
    %30 = vector.shape_cast %29 : vector<8x8x128xf32> to vector<64x128xf32>
    %31 = arith.truncf %30 : vector<64x128xf32> to vector<64x128xbf16>
    %c2 = arith.constant 2 : index
    %c0_17 = arith.constant 0 : index
    %c0_18 = arith.constant 0 : index
    %32 = vector.load %arg2[%c2, %c0_17, %c0_18] : memref<9x128x128xbf16, #tpu.memory_space<vmem>>, vector<1x128x128xbf16>
    %33 = vector.shape_cast %32 : vector<1x128x128xbf16> to vector<128x128xbf16>
    %cst_19 = arith.constant dense<0.000000e+00> : vector<64x128xf32>
    %34 = tpu.matmul %31, %33, %cst_19 {dimension_numbers = #tpu.dot_dimension_numbers<[1], [0], [0], [1], [0, 0, 1, 1], [], []>} : vector<64x128xbf16>, vector<128x128xbf16>, vector<64x128xf32> -> vector<64x128xf32>
    %35 = arith.addf %28, %34 : vector<64x128xf32>
    %36 = vector.extract_strided_slice %15 {offsets = [1, 0, 0], sizes = [8, 8, 128], strides = [1, 1, 1]} : vector<10x10x128xf32> to vector<8x8x128xf32>
    %37 = vector.shape_cast %36 : vector<8x8x128xf32> to vector<64x128xf32>
    %38 = arith.truncf %37 : vector<64x128xf32> to vector<64x128xbf16>
    %c3 = arith.constant 3 : index
    %c0_20 = arith.constant 0 : index
    %c0_21 = arith.constant 0 : index
    %39 = vector.load %arg2[%c3, %c0_20, %c0_21] : memref<9x128x128xbf16, #tpu.memory_space<vmem>>, vector<1x128x128xbf16>
    %40 = vector.shape_cast %39 : vector<1x128x128xbf16> to vector<128x128xbf16>
    %cst_22 = arith.constant dense<0.000000e+00> : vector<64x128xf32>
    %41 = tpu.matmul %38, %40, %cst_22 {dimension_numbers = #tpu.dot_dimension_numbers<[1], [0], [0], [1], [0, 0, 1, 1], [], []>} : vector<64x128xbf16>, vector<128x128xbf16>, vector<64x128xf32> -> vector<64x128xf32>
    %42 = arith.addf %35, %41 : vector<64x128xf32>
    %43 = vector.extract_strided_slice %15 {offsets = [1, 1, 0], sizes = [8, 8, 128], strides = [1, 1, 1]} : vector<10x10x128xf32> to vector<8x8x128xf32>
    %44 = vector.shape_cast %43 : vector<8x8x128xf32> to vector<64x128xf32>
    %45 = arith.truncf %44 : vector<64x128xf32> to vector<64x128xbf16>
    %c4 = arith.constant 4 : index
    %c0_23 = arith.constant 0 : index
    %c0_24 = arith.constant 0 : index
    %46 = vector.load %arg2[%c4, %c0_23, %c0_24] : memref<9x128x128xbf16, #tpu.memory_space<vmem>>, vector<1x128x128xbf16>
    %47 = vector.shape_cast %46 : vector<1x128x128xbf16> to vector<128x128xbf16>
    %cst_25 = arith.constant dense<0.000000e+00> : vector<64x128xf32>
    %48 = tpu.matmul %45, %47, %cst_25 {dimension_numbers = #tpu.dot_dimension_numbers<[1], [0], [0], [1], [0, 0, 1, 1], [], []>} : vector<64x128xbf16>, vector<128x128xbf16>, vector<64x128xf32> -> vector<64x128xf32>
    %49 = arith.addf %42, %48 : vector<64x128xf32>
    %50 = vector.extract_strided_slice %15 {offsets = [1, 2, 0], sizes = [8, 8, 128], strides = [1, 1, 1]} : vector<10x10x128xf32> to vector<8x8x128xf32>
    %51 = vector.shape_cast %50 : vector<8x8x128xf32> to vector<64x128xf32>
    %52 = arith.truncf %51 : vector<64x128xf32> to vector<64x128xbf16>
    %c5 = arith.constant 5 : index
    %c0_26 = arith.constant 0 : index
    %c0_27 = arith.constant 0 : index
    %53 = vector.load %arg2[%c5, %c0_26, %c0_27] : memref<9x128x128xbf16, #tpu.memory_space<vmem>>, vector<1x128x128xbf16>
    %54 = vector.shape_cast %53 : vector<1x128x128xbf16> to vector<128x128xbf16>
    %cst_28 = arith.constant dense<0.000000e+00> : vector<64x128xf32>
    %55 = tpu.matmul %52, %54, %cst_28 {dimension_numbers = #tpu.dot_dimension_numbers<[1], [0], [0], [1], [0, 0, 1, 1], [], []>} : vector<64x128xbf16>, vector<128x128xbf16>, vector<64x128xf32> -> vector<64x128xf32>
    %56 = arith.addf %49, %55 : vector<64x128xf32>
    %57 = vector.extract_strided_slice %15 {offsets = [2, 0, 0], sizes = [8, 8, 128], strides = [1, 1, 1]} : vector<10x10x128xf32> to vector<8x8x128xf32>
    %58 = vector.shape_cast %57 : vector<8x8x128xf32> to vector<64x128xf32>
    %59 = arith.truncf %58 : vector<64x128xf32> to vector<64x128xbf16>
    %c6 = arith.constant 6 : index
    %c0_29 = arith.constant 0 : index
    %c0_30 = arith.constant 0 : index
    %60 = vector.load %arg2[%c6, %c0_29, %c0_30] : memref<9x128x128xbf16, #tpu.memory_space<vmem>>, vector<1x128x128xbf16>
    %61 = vector.shape_cast %60 : vector<1x128x128xbf16> to vector<128x128xbf16>
    %cst_31 = arith.constant dense<0.000000e+00> : vector<64x128xf32>
    %62 = tpu.matmul %59, %61, %cst_31 {dimension_numbers = #tpu.dot_dimension_numbers<[1], [0], [0], [1], [0, 0, 1, 1], [], []>} : vector<64x128xbf16>, vector<128x128xbf16>, vector<64x128xf32> -> vector<64x128xf32>
    %63 = arith.addf %56, %62 : vector<64x128xf32>
    %64 = vector.extract_strided_slice %15 {offsets = [2, 1, 0], sizes = [8, 8, 128], strides = [1, 1, 1]} : vector<10x10x128xf32> to vector<8x8x128xf32>
    %65 = vector.shape_cast %64 : vector<8x8x128xf32> to vector<64x128xf32>
    %66 = arith.truncf %65 : vector<64x128xf32> to vector<64x128xbf16>
    %c7 = arith.constant 7 : index
    %c0_32 = arith.constant 0 : index
    %c0_33 = arith.constant 0 : index
    %67 = vector.load %arg2[%c7, %c0_32, %c0_33] : memref<9x128x128xbf16, #tpu.memory_space<vmem>>, vector<1x128x128xbf16>
    %68 = vector.shape_cast %67 : vector<1x128x128xbf16> to vector<128x128xbf16>
    %cst_34 = arith.constant dense<0.000000e+00> : vector<64x128xf32>
    %69 = tpu.matmul %66, %68, %cst_34 {dimension_numbers = #tpu.dot_dimension_numbers<[1], [0], [0], [1], [0, 0, 1, 1], [], []>} : vector<64x128xbf16>, vector<128x128xbf16>, vector<64x128xf32> -> vector<64x128xf32>
    %70 = arith.addf %63, %69 : vector<64x128xf32>
    %71 = vector.extract_strided_slice %15 {offsets = [2, 2, 0], sizes = [8, 8, 128], strides = [1, 1, 1]} : vector<10x10x128xf32> to vector<8x8x128xf32>
    %72 = vector.shape_cast %71 : vector<8x8x128xf32> to vector<64x128xf32>
    %73 = arith.truncf %72 : vector<64x128xf32> to vector<64x128xbf16>
    %c8 = arith.constant 8 : index
    %c0_35 = arith.constant 0 : index
    %c0_36 = arith.constant 0 : index
    %74 = vector.load %arg2[%c8, %c0_35, %c0_36] : memref<9x128x128xbf16, #tpu.memory_space<vmem>>, vector<1x128x128xbf16>
    %75 = vector.shape_cast %74 : vector<1x128x128xbf16> to vector<128x128xbf16>
    %cst_37 = arith.constant dense<0.000000e+00> : vector<64x128xf32>
    %76 = tpu.matmul %73, %75, %cst_37 {dimension_numbers = #tpu.dot_dimension_numbers<[1], [0], [0], [1], [0, 0, 1, 1], [], []>} : vector<64x128xbf16>, vector<128x128xbf16>, vector<64x128xf32> -> vector<64x128xf32>
    %77 = arith.addf %70, %76 : vector<64x128xf32>
    %78 = arith.truncf %77 : vector<64x128xf32> to vector<64x128xbf16>
    %c0_38 = arith.constant 0 : index
    %c0_39 = arith.constant 0 : index
    %c0_40 = arith.constant 0 : index
    %79 = vector.load %arg6[%c0_38, %c0_39, %c0_40] : memref<1x64x128xbf16, #tpu.memory_space<vmem>>, vector<1x64x128xbf16>
    %80 = vector.shape_cast %79 : vector<1x64x128xbf16> to vector<64x128xbf16>
    %81 = vector.shape_cast %78 : vector<64x128xbf16> to vector<1x64x128xbf16>
    tpu.vector_store %arg6[%c0_38, %c0_39, %c0_40], %81 {strides = array<i32>} : memref<1x64x128xbf16, #tpu.memory_space<vmem>>, vector<1x64x128xbf16>,
    %cst_41 = arith.constant dense<0.000000e+00> : vector<128xf32>
    %82 = vector.multi_reduction <add>, %77, %cst_41 [0] : vector<64x128xf32> to vector<128xf32>
    %83 = vector.shape_cast %82 : vector<128xf32> to vector<1x128xf32>
    %c0_42 = arith.constant 0 : index
    %c0_43 = arith.constant 0 : index
    %c0_44 = arith.constant 0 : index
    %84 = vector.load %arg7[%c0_42, %c0_43, %c0_44] : memref<1x1x128xf32, #tpu.memory_space<vmem>>, vector<1x1x128xf32>
    %85 = vector.shape_cast %84 : vector<1x1x128xf32> to vector<1x128xf32>
    %86 = vector.shape_cast %83 : vector<1x128xf32> to vector<1x1x128xf32>
    tpu.vector_store %arg7[%c0_42, %c0_43, %c0_44], %86 {strides = array<i32>} : memref<1x1x128xf32, #tpu.memory_space<vmem>>, vector<1x1x128xf32>,
    %87 = arith.mulf %77, %77 : vector<64x128xf32>
    %cst_45 = arith.constant dense<0.000000e+00> : vector<128xf32>
    %88 = vector.multi_reduction <add>, %87, %cst_45 [0] : vector<64x128xf32> to vector<128xf32>
    %89 = vector.shape_cast %88 : vector<128xf32> to vector<1x128xf32>
    %c0_46 = arith.constant 0 : index
    %c0_47 = arith.constant 0 : index
    %c0_48 = arith.constant 0 : index
    %90 = vector.load %arg8[%c0_46, %c0_47, %c0_48] : memref<1x1x128xf32, #tpu.memory_space<vmem>>, vector<1x1x128xf32>
    %91 = vector.shape_cast %90 : vector<1x1x128xf32> to vector<1x128xf32>
    %92 = vector.shape_cast %89 : vector<1x128xf32> to vector<1x1x128xf32>
    tpu.vector_store %arg8[%c0_46, %c0_47, %c0_48], %92 {strides = array<i32>} : memref<1x1x128xf32, #tpu.memory_space<vmem>>, vector<1x1x128xf32>,
    return
  }
  func.func @transform_0(%arg0: i32) -> (i32, i32, i32, i32) {
    %c0_i32 = arith.constant 0 : i32
    %c0_i32_0 = arith.constant 0 : i32
    %c0_i32_1 = arith.constant 0 : i32
    %c0_i32_2 = arith.constant 0 : i32
    return %arg0, %c0_i32, %c0_i32_0, %c0_i32_1 : i32, i32, i32, i32
  }
  func.func @transform_1(%arg0: i32) -> (i32, i32, i32) {
    %c0_i32 = arith.constant 0 : i32
    %c0_i32_0 = arith.constant 0 : i32
    %c0_i32_1 = arith.constant 0 : i32
    %c0_i32_2 = arith.constant 0 : i32
    return %c0_i32, %c0_i32_0, %c0_i32_1 : i32, i32, i32
  }
  func.func @transform_2(%arg0: i32) -> (i32, i32) {
    %c0_i32 = arith.constant 0 : i32
    %c0_i32_0 = arith.constant 0 : i32
    %c0_i32_1 = arith.constant 0 : i32
    return %c0_i32, %c0_i32_0 : i32, i32
  }
  func.func @transform_3(%arg0: i32) -> (i32, i32) {
    %c0_i32 = arith.constant 0 : i32
    %c0_i32_0 = arith.constant 0 : i32
    %c0_i32_1 = arith.constant 0 : i32
    return %c0_i32, %c0_i32_0 : i32, i32
  }
  func.func @transform_4(%arg0: i32) -> (i32, i32, i32) {
    %c0_i32 = arith.constant 0 : i32
    %c0_i32_0 = arith.constant 0 : i32
    %c0_i32_1 = arith.constant 0 : i32
    %c0_i32_2 = arith.constant 0 : i32
    return %c0_i32, %c0_i32_0, %c0_i32_1 : i32, i32, i32
  }
  func.func @transform_5(%arg0: i32) -> (i32, i32, i32) {
    %c0_i32 = arith.constant 0 : i32
    %c0_i32_0 = arith.constant 0 : i32
    %c0_i32_1 = arith.constant 0 : i32
    return %arg0, %c0_i32, %c0_i32_0 : i32, i32, i32
  }
  func.func @transform_6(%arg0: i32) -> (i32, i32, i32) {
    %c0_i32 = arith.constant 0 : i32
    %c0_i32_0 = arith.constant 0 : i32
    %c0_i32_1 = arith.constant 0 : i32
    return %arg0, %c0_i32, %c0_i32_0 : i32, i32, i32
  }
  func.func @transform_7(%arg0: i32) -> (i32, i32, i32) {
    %c0_i32 = arith.constant 0 : i32
    %c0_i32_0 = arith.constant 0 : i32
    %c0_i32_1 = arith.constant 0 : i32
    return %arg0, %c0_i32, %c0_i32_0 : i32, i32, i32
  }
}

module attributes {stable_mosaic.version = 11 : i64} {
  func.func @_bn_add_relu_kernel(%arg0: i32, %arg1: memref<1x64x128xbf16, #tpu.memory_space<vmem>>, %arg2: memref<1x128xf32, #tpu.memory_space<vmem>>, %arg3: memref<1x128xf32, #tpu.memory_space<vmem>>, %arg4: memref<1x64x128xbf16, #tpu.memory_space<vmem>>, %arg5: memref<1x64x128xf32, #tpu.memory_space<vmem>>) attributes {dimension_semantics = [#tpu.dimension_semantics<parallel>], iteration_bounds = array<i64: 2>, scalar_prefetch = 0 : i64, scratch_operands = 0 : i64, tpu.core_type = #tpu.core_type<tc>, window_params = [{transform_indices = @transform_0, window_bounds = array<i64: 1, 64, 128>}, {pipeline_mode = #tpu.pipeline_mode<synchronous>, transform_indices = @transform_1, window_bounds = array<i64: 1, 128>}, {pipeline_mode = #tpu.pipeline_mode<synchronous>, transform_indices = @transform_2, window_bounds = array<i64: 1, 128>}, {transform_indices = @transform_3, window_bounds = array<i64: 1, 64, 128>}, {transform_indices = @transform_4, window_bounds = array<i64: 1, 64, 128>}]} {
    %c0 = arith.constant 0 : index
    %c0_0 = arith.constant 0 : index
    %c0_1 = arith.constant 0 : index
    %0 = vector.load %arg1[%c0, %c0_0, %c0_1] : memref<1x64x128xbf16, #tpu.memory_space<vmem>>, vector<1x64x128xbf16>
    %1 = vector.shape_cast %0 : vector<1x64x128xbf16> to vector<64x128xbf16>
    %2 = arith.extf %1 : vector<64x128xbf16> to vector<64x128xf32>
    %c0_2 = arith.constant 0 : index
    %c0_3 = arith.constant 0 : index
    %3 = vector.load %arg2[%c0_2, %c0_3] : memref<1x128xf32, #tpu.memory_space<vmem>>, vector<1x128xf32>
    %4 = vector.broadcast %3 : vector<1x128xf32> to vector<64x128xf32>
    %5 = arith.mulf %2, %4 : vector<64x128xf32>
    %c0_4 = arith.constant 0 : index
    %c0_5 = arith.constant 0 : index
    %6 = vector.load %arg3[%c0_4, %c0_5] : memref<1x128xf32, #tpu.memory_space<vmem>>, vector<1x128xf32>
    %7 = vector.broadcast %6 : vector<1x128xf32> to vector<64x128xf32>
    %8 = arith.addf %5, %7 : vector<64x128xf32>
    %c0_6 = arith.constant 0 : index
    %c0_7 = arith.constant 0 : index
    %c0_8 = arith.constant 0 : index
    %9 = vector.load %arg4[%c0_6, %c0_7, %c0_8] : memref<1x64x128xbf16, #tpu.memory_space<vmem>>, vector<1x64x128xbf16>
    %10 = vector.shape_cast %9 : vector<1x64x128xbf16> to vector<64x128xbf16>
    %11 = arith.extf %10 : vector<64x128xbf16> to vector<64x128xf32>
    %12 = arith.addf %11, %8 : vector<64x128xf32>
    %cst = arith.constant 0.000000e+00 : f32
    %13 = vector.broadcast %cst : f32 to vector<64x128xf32>
    %14 = arith.maximumf %12, %13 : vector<64x128xf32>
    %c0_9 = arith.constant 0 : index
    %c0_10 = arith.constant 0 : index
    %c0_11 = arith.constant 0 : index
    %15 = vector.load %arg5[%c0_9, %c0_10, %c0_11] : memref<1x64x128xf32, #tpu.memory_space<vmem>>, vector<1x64x128xf32>
    %16 = vector.shape_cast %15 : vector<1x64x128xf32> to vector<64x128xf32>
    %17 = vector.shape_cast %14 : vector<64x128xf32> to vector<1x64x128xf32>
    tpu.vector_store %arg5[%c0_9, %c0_10, %c0_11], %17 {strides = array<i32>} : memref<1x64x128xf32, #tpu.memory_space<vmem>>, vector<1x64x128xf32>,
    return
  }
  func.func @transform_0(%arg0: i32) -> (i32, i32, i32) {
    %c0_i32 = arith.constant 0 : i32
    %c0_i32_0 = arith.constant 0 : i32
    %c0_i32_1 = arith.constant 0 : i32
    return %arg0, %c0_i32, %c0_i32_0 : i32, i32, i32
  }
  func.func @transform_1(%arg0: i32) -> (i32, i32) {
    %c0_i32 = arith.constant 0 : i32
    %c0_i32_0 = arith.constant 0 : i32
    %c0_i32_1 = arith.constant 0 : i32
    return %c0_i32, %c0_i32_0 : i32, i32
  }
  func.func @transform_2(%arg0: i32) -> (i32, i32) {
    %c0_i32 = arith.constant 0 : i32
    %c0_i32_0 = arith.constant 0 : i32
    %c0_i32_1 = arith.constant 0 : i32
    return %c0_i32, %c0_i32_0 : i32, i32
  }
  func.func @transform_3(%arg0: i32) -> (i32, i32, i32) {
    %c0_i32 = arith.constant 0 : i32
    %c0_i32_0 = arith.constant 0 : i32
    %c0_i32_1 = arith.constant 0 : i32
    return %arg0, %c0_i32, %c0_i32_0 : i32, i32, i32
  }
  func.func @transform_4(%arg0: i32) -> (i32, i32, i32) {
    %c0_i32 = arith.constant 0 : i32
    %c0_i32_0 = arith.constant 0 : i32
    %c0_i32_1 = arith.constant 0 : i32
    return %arg0, %c0_i32, %c0_i32_0 : i32, i32, i32
  }
}

</mosaic_0001>

<bundles_post_ra>
// kernel: resblock_forward.4
= control target key start
LH: loop header
LB: loop body
LE: loop exit
PB: predicated region body
PF: predicated region fallthrough
CT: control target
= control target key end

     0   :  { %s919_s9 = smov 0   ;;  %s1035_s0 = inlined_call_operand.vmem [shape: bf16[2,9,9,16], index: 0, kind: input, shape index: {}]   ;;  %s1036_s1 = inlined_call_operand.vmem [shape: bf16[4,16,128], index: 1, kind: input, shape index: {}]   ;;  %s1037_s2 = inlined_call_operand.vmem [shape: bf16[2,64,128], index: 2, kind: output, shape index: {}]  }
   0x1 LB: > { %s707_s10 = sadd.s32 4294967295, %s902_s9   ;;  %p711_p0 = scmp.ge.s32.totalorder %s902_s9, 1  ;;  %s902_s9 = sphi %s919_s9, %s12_s9  }
   0x2   : > { %p112_p1 = scmp.lt.s32.totalorder %s902_s9, 3 }
   0x4   : > { %p113_p2 = pnand %p711_p0, %p112_p1 }
   0x5   : > { %v884_v0 = vld [vmem:[%s1036_s1 + $0x10] sm:$0xff] (!%p113_p2)   ;;  %p134_p3 = scmp.lt.s32.totalorder (!%p113_p2), %s707_s10, 1  ;;  %v888_v1 = vld [vmem:[%s1036_s1 + $0x8] sm:$0xff] (!%p113_p2)   ;;  %v938_v2 = vld [vmem:[%s1036_s1] sm:$0xff] (!%p113_p2)   ;;  %vm249_vm0 = vcmask (!%p113_p2), 130048   ;;  %vm203_vm1 = vcmask (!%p113_p2), 1046528  }
   0x6   : > { %116 = sbr.rel (%p113_p2) target bundleno = 272 (0x110), region = 28  ;;  %831 = vmatprep.subr.bf16.mxu0 (!%p113_p2), %v884_v0  ;;  %811 = vmatprep.subr.bf16.mxu1 (!%p113_p2), %v888_v1  ;;  %v891_v3 = vld [vmem:[%s1036_s1 + $0x18] sm:$0xff] (!%p113_p2)  }
   0x7   : > { %832 = vmatpush3.bf16.msra.mxu0 (!%p113_p2), %v884_v0  ;;  %812 = vmatpush3.bf16.msra.mxu1 (!%p113_p2), %v888_v1 }
   0x8   : > { %821 = vmatprep.subr.bf16.mxu1 (!%p113_p2), %v938_v2  ;;  %841 = vmatprep.subr.bf16.mxu0 (!%p113_p2), %v891_v3 }
   0xd   : > { %s1039_s10 = smov (!%p134_p3, %s707_s10), 1 }
   0xe   : > { %s875_s17 = smul.u32 72, %s1039_s10  ;;  %s759_s23 = sshll.u32 %s1039_s10, 5 }
   0xf   : > { %s143_s26 = scalar_lea.vmem %s1037_s2, %s759_s23 }
  0x10   : > { %s948_s22 = scalar_lea.vmem %s1035_s0, %s875_s17 }
  0x11   : > { %v951_v4 = vld [vmem:[%s948_s22] sm:$0xf]  ;;  %v954_v5 = vld [vmem:[%s948_s22 + $0x8] sm:$0xf]  ;;  %v957_v6 = vld [vmem:[%s948_s22 + $0x10] sm:$0xf] }
  0x12   : > { %v960_v7 = vld [vmem:[%s948_s22 + $0x18] sm:$0xf]  ;;  %v165_v8 = vunpack.c.l.bf16 %v954_v5  ;;  %v167_v9 = vunpack.c.l.bf16 %v957_v6  ;;  %v731_v10 = vcombine.low %v954_v5, %v957_v6  ;;  %v967_v11 = vld [vmem:[%s948_s22 + $0x20] sm:$0xf]  ;;  %v146_v12 = vld [vmem:[%s948_s22 + $0x4] sm:$0x1]  ;;  %v163_v21 = vunpack.c.l.bf16 %v951_v4 }
  0x13   : > { %v169_v13 = vunpack.c.l.bf16 %v960_v7  ;;  %v732_v14 = vcombine.low %v960_v7, %v967_v11  ;;  %v148_v15 = vld [vmem:[%s948_s22 + $0xc] sm:$0x1]  ;;  %v150_v16 = vld [vmem:[%s948_s22 + $0x14] sm:$0x1]  ;;  %v152_v17 = vld [vmem:[%s948_s22 + $0x1c] sm:$0x1]  ;;  %v171_v19 = vunpack.c.l.bf16 %v967_v11  ;;  %v164_v22 = vunpack.c.l.bf16 %v146_v12 }
  0x14   : > { %v207_v18 = vrot.slane %v165_v8, 1  ;;  %833 = vmatprep.mubr.msk.bf16.mxu0 %vm249_vm0, %v731_v10  ;;  %v154_v20 = vld [vmem:[%s948_s22 + $0x24] sm:$0x1]  ;;  %v981_v23 = vld [vmem:[%s948_s22 + $0x28] sm:$0xf]  ;;  %v210_v24 = vrot.slane %v167_v9, 1  ;;  %v166_v25 = vunpack.c.l.bf16 %v148_v15  ;;  %v168_v26 = vunpack.c.l.bf16 %v150_v16 }
  0x15   : > { %834 = vmatmul.mubr.msk.bf16.vlgmr.msra.gmra.mrb[0].mxu0 %vm249_vm0, %v732_v14  ;;  %v170_v27 = vunpack.c.l.bf16 %v152_v17  ;;  %v985_v28 = vld [vmem:[%s948_s22 + $0x30] sm:$0xf]  ;;  %v172_v29 = vunpack.c.l.bf16 %v154_v20  ;;  %v204_v30 = vrot.slane %v163_v21, 1  ;;  %v205_v31 = vrot.slane %v164_v22, 1  ;;  %v159_v40 = vld [vmem:[%s948_s22 + $0x38] sm:$0xf] }
  0x16   : > { %v213_v32 = vrot.slane %v169_v13, 1  ;;  %842 = vmatpush3.bf16.msra.mxu0 %v891_v3  ;;  %v208_v33 = vrot.slane %v166_v25, 1  ;;  %v211_v34 = vrot.slane %v168_v26, 1  ;;  %v173_v36 = vunpack.c.l.bf16 %v981_v23  ;;  %v161_v41 = vld [vmem:[%s948_s22 + $0x40] sm:$0xf] }
  0x17   : > { %v214_v35 = vrot.slane %v170_v27, 1  ;;  %v206_v37 = vsel %vm203_vm1, %v204_v30, %v205_v31  ;;  %v175_v38 = vunpack.c.l.bf16 %v985_v28  ;;  %v733_v39 = vcombine.low %v981_v23, %v985_v28  ;;  %v156_v45 = vld [vmem:[%s948_s22 + $0x2c] sm:$0x1]  ;;  %v158_v46 = vld [vmem:[%s948_s22 + $0x34] sm:$0x1] }
  0x18   : > { %v209_v42 = vsel %vm203_vm1, %v207_v18, %v208_v33  ;;  %v212_v43 = vsel %vm203_vm1, %v210_v24, %v211_v34  ;;  %v160_v47 = vld [vmem:[%s948_s22 + $0x3c] sm:$0x1]  ;;  %v216_v48 = vrot.slane %v171_v19, 1  ;;  %v217_v49 = vrot.slane %v172_v29, 1  ;;  %v162_v60 = vld [vmem:[%s948_s22 + $0x44] sm:$0x1] }
  0x19   : > { %v215_v44 = vsel %vm203_vm1, %v213_v32, %v214_v35  ;;  %v236_v50 = vpack.c.bf16 %v209_v42, %v206_v37  ;;  %837 = vmatprep.mubr.msk.bf16.mxu0 %vm249_vm0, %v733_v39  ;;  %v514_v52 = vpack.c.bf16 %v212_v43, %v209_v42  ;;  %v219_v53 = vrot.slane %v173_v36, 1 }
  0x1a   : > { %v237_v51 = vpack.c.bf16 %v215_v44, %v212_v43  ;;  %v222_v54 = vrot.slane %v175_v38, 1  ;;  %v177_v55 = vunpack.c.l.bf16 %v159_v40  ;;  %v734_v56 = vcombine.low %v159_v40, %v161_v41 }
  0x1b   : > { %813 = vmatprep.mubr.msk.bf16.mxu1 %vm249_vm0, %v236_v50  ;;  %v174_v57 = vunpack.c.l.bf16 %v156_v45  ;;  %v176_v58 = vunpack.c.l.bf16 %v158_v46  ;;  %v178_v59 = vunpack.c.l.bf16 %v160_v47  ;;  %v218_v62 = vsel %vm203_vm1, %v216_v48, %v217_v49 }
  0x1c   : > { %814 = vmatmul.mubr.msk.bf16.vlgmr.msra.gmra.mrb[0].mxu1 %vm249_vm0, %v237_v51  ;;  %v225_v61 = vrot.slane %v177_v55, 1  ;;  %v179_v3 = vunpack.c.l.bf16 %v161_v41  ;;  %v180_v8 = vunpack.c.l.bf16 %v162_v60  ;;  %v515_v15 = vpack.c.bf16 %v218_v62, %v215_v44 }
  0x1d   : > { %822 = vmatpush3.bf16.msra.mxu1 %v938_v2  ;;  %838 = vmatmul.mubr.msk.bf16.gmra.mrb[4].mxu0 %vm249_vm0, %v734_v56  ;;  %v220_v63 = vrot.slane %v174_v57, 1  ;;  %v223_v0 = vrot.slane %v176_v58, 1  ;;  %v226_v1 = vrot.slane %v178_v59, 1  ;;  %v715_v2 = vcombine.low %v951_v4, %v954_v5 }
  0x1e   : > { %843 = vmatprep.mubr.msk.bf16.mxu0 %vm249_vm0, %v514_v52  ;;  %v510_v16 = vrot.slane %v179_v3, 1  ;;  %v511_v18 = vrot.slane %v180_v8, 1  ;;  %v716_v4 = vcombine.low %v957_v6, %v960_v7  ;;  %v717_v20 = vcombine.low %v967_v11, %v981_v23 }
  0x1f   : > { %v221_v9 = vsel %vm203_vm1, %v219_v53, %v220_v63  ;;  %v224_v10 = vsel %vm203_vm1, %v222_v54, %v223_v0  ;;  %v227_v12 = vsel %vm203_vm1, %v225_v61, %v226_v1  ;;  %v718_v21 = vcombine.low %v985_v28, %v159_v40 }
  0x20   : > { %v238_v13 = vpack.c.bf16 %v221_v9, %v218_v62  ;;  %v239_v14 = vpack.c.bf16 %v227_v12, %v224_v10  ;;  %v516_v17 = vpack.c.bf16 %v224_v10, %v221_v9  ;;  %v512_v19 = vsel %vm203_vm1, %v510_v16, %v511_v18 }
  0x21   : > { %v517_v5 = vpack.c.bf16 %v512_v19, %v227_v12 }
  0x22   : > { %817 = vmatprep.mubr.msk.bf16.mxu1 %vm249_vm0, %v238_v13 }
  0x24   : > { %818 = vmatmul.mubr.msk.bf16.gmra.mrb[4].mxu1 %vm249_vm0, %v239_v14 }
  0x25   : > { %844 = vmatmul.mubr.msk.bf16.vlgmr.msra.gmra.mrb[0].mxu0 %vm249_vm0, %v515_v15  ;;  %823 = vmatprep.mubr.msk.bf16.mxu1 %vm249_vm0, %v715_v2 }
  0x26   : > { %847 = vmatprep.mubr.msk.bf16.mxu0 %vm249_vm0, %v516_v17 }
  0x2c   : > { %824 = vmatmul.mubr.msk.bf16.vlgmr.msra.gmra.mrb[0].mxu1 %vm249_vm0, %v716_v4 }
  0x2d   : > { %848 = vmatmul.mubr.msk.bf16.gmra.mrb[4].mxu0 %vm249_vm0, %v517_v5  ;;  %827 = vmatprep.mubr.msk.bf16.mxu1 %vm249_vm0, %v717_v20 }
  0x34   : > { %828 = vmatmul.mubr.msk.bf16.gmra.mrb[4].mxu1 %vm249_vm0, %v718_v21 }
  0xf8   : > { %v845_v22 = vpop.f32.mrb[0].mxu0 }
  0xf9   : > { %v573_v24 = vpop.f32.mrb[1].mxu0 }
  0xfa   : > { %v846_v25 = vpop.f32.mrb[2].mxu0 }
  0xfb   : > { %v576_v26 = vpop.f32.mrb[3].mxu0 }
  0xff   : > { %v825_v27 = vpop.f32.mrb[0].mxu1 }
 0x100   : > { %v851_v6 = vadd.f32 %v845_v22, %v825_v27  ;;  %v379_v7 = vpop.f32.mrb[1].mxu1  ;;  %v849_v29 = vpop.f32.mrb[4].mxu0 }
 0x101   : > { %v852_v11 = vadd.f32 %v573_v24, %v379_v7  ;;  %v826_v23 = vpop.f32.mrb[2].mxu1  ;;  %v589_v30 = vpop.f32.mrb[5].mxu0 }
 0x102   : > { %v853_v31 = vadd.f32 %v846_v25, %v826_v23  ;;  %v382_v32 = vpop.f32.mrb[3].mxu1  ;;  %v850_v33 = vpop.f32.mrb[6].mxu0 }
 0x103   : > { %v854_v28 = vadd.f32 %v576_v26, %v382_v32  ;;  %v592_v34 = vpop.f32.mrb[7].mxu0 }
 0x104   : > { %v776_v35 = vpack.c.bf16 %v853_v31, %v851_v6 }
 0x105   : > { %v771_v36 = vpack.c.bf16 %v854_v28, %v852_v11 }
 0x106   : > { %788 = vst [vmem:[%s143_s26 + $0x8] sm:$0xff] %v776_v35  }
 0x107   : > { %772 = vst [vmem:[%s143_s26] sm:$0xff] %v771_v36   ;;  %v829_v37 = vpop.f32.mrb[4].mxu1 }
 0x108   : > { %v855_v38 = vadd.f32 %v849_v29, %v829_v37  ;;  %v395_v39 = vpop.f32.mrb[5].mxu1 }
 0x109   : > { %v856_v40 = vadd.f32 %v589_v30, %v395_v39  ;;  %v830_v41 = vpop.f32.mrb[6].mxu1 }
 0x10a   : > { %v857_v42 = vadd.f32 %v850_v33, %v830_v41  ;;  %v398_v43 = vpop.f32.mrb[7].mxu1 }
 0x10b   : > { %v858_v44 = vadd.f32 %v592_v34, %v398_v43 }
 0x10c   : > { %v786_v45 = vpack.c.bf16 %v857_v42, %v855_v38 }
 0x10d   : > { %v781_v46 = vpack.c.bf16 %v858_v44, %v856_v40 }
 0x10e   : > { %790 = vst [vmem:[%s143_s26 + $0x18] sm:$0xff] %v786_v45  }
 0x10f   : > { %789 = vst [vmem:[%s143_s26 + $0x10] sm:$0xff] %v781_v46  }
 0x110 PF: > { %s12_s9 = sadd.s32 1, %s902_s9  }
 0x111   : > { %p9_p4 = scmp.ge.s32.totalorder %s12_s9, 4  }
 0x113   :  { %11 = sbr.rel (!%p9_p4) target bundleno = 1 (0x1), region = 61 }

// kernel: resblock_forward.7
= control target key start
LH: loop header
LB: loop body
LE: loop exit
PB: predicated region body
PF: predicated region fallthrough
CT: control target
= control target key end

     0   :  { %s468_s15 = smov 0   ;;  %s498_s0 = inlined_call_operand.vmem [shape: bf16[2,64,128], index: 0, kind: input, shape index: {}]   ;;  %s499_s1 = inlined_call_operand.vmem [shape: f32[1,128], index: 1, kind: input, shape index: {}]   ;;  %s500_s2 = inlined_call_operand.vmem [shape: f32[1,128], index: 2, kind: input, shape index: {}]   ;;  %s501_s3 = inlined_call_operand.vmem [shape: bf16[2,64,128], index: 3, kind: input, shape index: {}]   ;;  %s502_s4 = inlined_call_operand.vmem [shape: f32[2,64,128], index: 4, kind: output, shape index: {}]  }
   0x1 LB: > { %s371_s16 = sadd.s32 4294967295, %s441_s15   ;;  %p375_p0 = scmp.ge.s32.totalorder %s441_s15, 1  ;;  %s441_s15 = sphi %s468_s15, %s14_s15  }
   0x2   : > { %p172_p1 = scmp.lt.s32.totalorder %s441_s15, 3 }
   0x4   : > { %p173_p2 = pnand %p375_p0, %p172_p1 }
   0x5   : > { %p203_p3 = scmp.lt.s32.totalorder (!%p173_p2), %s371_s16, 1  ;;  %v382_v0 = vld [vmem:[%s499_s1] ss:$0 sm:$0xff] (!%p173_p2) }
   0x6   : > { %176 = sbr.rel (%p173_p2) target bundleno = 35 (0x23), region = 36  ;;  %v383_v11 = vld [vmem:[%s500_s2] ss:$0 sm:$0xff] (!%p173_p2) }
   0xd   : > { %s504_s16 = smov (!%p203_p3, %s371_s16), 1 }
   0xe   : > { %s386_s17 = sshll.u32 %s504_s16, 5  ;;  %s388_s28 = sshll.u32 %s504_s16, 6 }
   0xf   : > { %s207_s20 = scalar_lea.vmem %s498_s0, %s386_s17  ;;  %s212_s23 = scalar_lea.vmem %s501_s3, %s386_s17 }
  0x10   : > { %v390_v1 = vld [vmem:[%s207_s20] sm:$0xff]   ;;  %v421_v3 = vld [vmem:[%s207_s20 + $0x8] sm:$0xff]   ;;  %v422_v9 = vld [vmem:[%s207_s20 + $0x10] sm:$0xff]   ;;  %s217_s5 = scalar_lea.vmem %s502_s4, %s388_s28 }
  0x11   : > { %v406_v2 = vld [vmem:[%s212_s23] sm:$0xff]   ;;  %v391_v4 = vunpack.c.l.bf16 %v390_v1  ;;  %v392_v6 = vunpack.c.h.bf16 %v390_v1  ;;  %v424_v8 = vld [vmem:[%s212_s23 + $0x8] sm:$0xff]   ;;  %v425_v10 = vld [vmem:[%s212_s23 + $0x10] sm:$0xff]   ;;  %v395_v12 = vunpack.c.l.bf16 %v421_v3  ;;  %v396_v14 = vunpack.c.h.bf16 %v421_v3 }
  0x12   : > { %v407_v5 = vunpack.c.l.bf16 %v406_v2  ;;  %v408_v7 = vunpack.c.h.bf16 %v406_v2  ;;  %v411_v13 = vunpack.c.l.bf16 %v424_v8  ;;  %v412_v15 = vunpack.c.h.bf16 %v424_v8  ;;  %v423_v16 = vld [vmem:[%s207_s20 + $0x18] sm:$0xff]  }
  0x13   : > { %v241_v17 = vmul.f32 %v391_v4, %v382_v0  ;;  %v242_v18 = vmul.f32 %v392_v6, %v382_v0  ;;  %v399_v19 = vunpack.c.l.bf16 %v422_v9  ;;  %v415_v20 = vunpack.c.l.bf16 %v425_v10  ;;  %v426_v21 = vld [vmem:[%s212_s23 + $0x18] sm:$0xff]  }
  0x14   : > { %v243_v22 = vmul.f32 %v395_v12, %v382_v0  ;;  %v244_v23 = vmul.f32 %v396_v14, %v382_v0  ;;  %v400_v24 = vunpack.c.h.bf16 %v422_v9  ;;  %v416_v25 = vunpack.c.h.bf16 %v425_v10 }
  0x15   : > { %v256_v26 = vadd.f32 %v383_v11, %v241_v17  ;;  %v257_v27 = vadd.f32 %v383_v11, %v242_v18  ;;  %v245_v28 = vmul.f32 %v399_v19, %v382_v0  ;;  %v403_v29 = vunpack.c.l.bf16 %v423_v16 }
  0x16   : > { %v258_v30 = vadd.f32 %v383_v11, %v243_v22  ;;  %v259_v31 = vadd.f32 %v383_v11, %v244_v23  ;;  %v246_v32 = vmul.f32 %v400_v24, %v382_v0  ;;  %v419_v33 = vunpack.c.l.bf16 %v426_v21 }
  0x17   : > { %v280_v34 = vadd.f32 %v407_v5, %v256_v26  ;;  %v281_v35 = vadd.f32 %v408_v7, %v257_v27  ;;  %v260_v36 = vadd.f32 %v383_v11, %v245_v28  ;;  %v247_v37 = vmul.f32 %v403_v29, %v382_v0 }
  0x18   : > { %v282_v38 = vadd.f32 %v411_v13, %v258_v30  ;;  %v283_v39 = vadd.f32 %v412_v15, %v259_v31  ;;  %v261_v40 = vadd.f32 %v383_v11, %v246_v32  ;;  %v404_v41 = vunpack.c.h.bf16 %v423_v16 }
  0x19   : > { %v288_v42 = vmax.f32 %v280_v34, 0.0  ;;  %v289_v43 = vmax.f32 %v281_v35, 0.0  ;;  %v284_v44 = vadd.f32 %v415_v20, %v260_v36  ;;  %v262_v45 = vadd.f32 %v383_v11, %v247_v37 }
  0x1a   : > { %v290_v46 = vmax.f32 %v282_v38, 0.0  ;;  %v291_v47 = vmax.f32 %v283_v39, 0.0  ;;  %v285_v48 = vadd.f32 %v416_v25, %v261_v40  ;;  %v248_v49 = vmul.f32 %v404_v41, %v382_v0 }
  0x1b   : > { %296 = vst [vmem:[%s217_s5] sm:$0xff] %v288_v42  ;;  %297 = vst [vmem:[%s217_s5 + $0x8] sm:$0xff] %v289_v43  ;;  %v292_v50 = vmax.f32 %v284_v44, 0.0  ;;  %v286_v51 = vadd.f32 %v419_v33, %v262_v45  ;;  %v420_v52 = vunpack.c.h.bf16 %v426_v21 }
  0x1c   : > { %298 = vst [vmem:[%s217_s5 + $0x10] sm:$0xff] %v290_v46  ;;  %299 = vst [vmem:[%s217_s5 + $0x18] sm:$0xff] %v291_v47  ;;  %v293_v53 = vmax.f32 %v285_v48, 0.0  ;;  %v263_v54 = vadd.f32 %v383_v11, %v248_v49 }
  0x1d   : > { %300 = vst [vmem:[%s217_s5 + $0x20] sm:$0xff] %v292_v50  ;;  %v294_v55 = vmax.f32 %v286_v51, 0.0 }
  0x1e   : > { %301 = vst [vmem:[%s217_s5 + $0x28] sm:$0xff] %v293_v53  ;;  %v287_v56 = vadd.f32 %v420_v52, %v263_v54 }
  0x1f   : > { %302 = vst [vmem:[%s217_s5 + $0x30] sm:$0xff] %v294_v55 }
  0x20   : > { %v295_v57 = vmax.f32 %v287_v56, 0.0 }
  0x22   : > { %303 = vst [vmem:[%s217_s5 + $0x38] sm:$0xff] %v295_v57 }
  0x23 PF: > { %s14_s15 = sadd.s32 1, %s441_s15  }
  0x24   : > { %p11_p4 = scmp.ge.s32.totalorder %s14_s15, 4  }
  0x26   :  { %13 = sbr.rel (!%p11_p4) target bundleno = 1 (0x1), region = 69 }

// kernel: resblock_forward.5
= control target key start
LH: loop header
LB: loop body
LE: loop exit
PB: predicated region body
PF: predicated region fallthrough
CT: control target
= control target key end

     0   :  { %s2577_s15 = smov 0   ;;  %s3106_s0 = inlined_call_operand.vmem [shape: bf16[2,10,10,128], index: 0, kind: input, shape index: {}]   ;;  %s3107_s1 = inlined_call_operand.vmem [shape: bf16[9,128,128], index: 1, kind: input, shape index: {}]   ;;  %s3108_s2 = inlined_call_operand.vmem [shape: bf16[2,64,128], index: 2, kind: output, shape index: {0}]   ;;  %s3109_s3 = inlined_call_operand.vmem [shape: f32[2,1,128], index: 3, kind: output, shape index: {1}]   ;;  %s3110_s4 = inlined_call_operand.vmem [shape: f32[2,1,128], index: 4, kind: output, shape index: {2}]  }
   0x1 LB: > { %s1791_s16 = sadd.s32 4294967295, %s2550_s15   ;;  %p1795_p0 = scmp.ge.s32.totalorder %s2550_s15, 1  ;;  %s2550_s15 = sphi %s2577_s15, %s15_s15  }
   0x2   : > { %p167_p1 = scmp.lt.s32.totalorder %s2550_s15, 3 }
   0x4   : > { %p168_p2 = pnand %p1795_p0, %p167_p1 }
   0x5   : > { %v2463_v0 = vld [vmem:[%s3107_s1 + $0x40] sm:$0xff] (!%p168_p2)   ;;  %p199_p3 = scmp.lt.s32.totalorder (!%p168_p2), %s1791_s16, 1  ;;  %v2465_v2 = vld [vmem:[%s3107_s1 + $0x48] sm:$0xff] (!%p168_p2)   ;;  %v2467_v4 = vld [vmem:[%s3107_s1 + $0x50] sm:$0xff] (!%p168_p2)   ;;  %vm292_vm0 = vcmask (!%p168_p2), 1046528   ;;  %vm572_vm1 = vcmask (!%p168_p2), 1045504  }
   0x6   : > { %171 = sbr.rel (%p168_p2) target bundleno = 413 (0x19d), region = 28  ;;  %v2464_v1 = vld [vmem:[%s3107_s1 + $0x100] sm:$0xff] (!%p168_p2)   ;;  %2158 = vmatprep.subr.bf16.mxu1 (!%p168_p2), %v2463_v0  ;;  %v2466_v3 = vld [vmem:[%s3107_s1 + $0x108] sm:$0xff] (!%p168_p2)   ;;  %v2468_v5 = vld [vmem:[%s3107_s1 + $0x110] sm:$0xff] (!%p168_p2)  }
   0x7   : > { %2254 = vmatprep.subr.bf16.mxu0 (!%p168_p2), %v2464_v1  ;;  %2159 = vmatpush3.bf16.msra.mxu1 (!%p168_p2), %v2463_v0  ;;  %v2469_v6 = vld [vmem:[%s3107_s1 + $0x58] sm:$0xff] (!%p168_p2)   ;;  %v2471_v8 = vld [vmem:[%s3107_s1 + $0x60] sm:$0xff] (!%p168_p2)   ;;  %v2473_v10 = vld [vmem:[%s3107_s1 + $0x68] sm:$0xff] (!%p168_p2)  }
   0x8   : > { %2255 = vmatpush3.bf16.msra.mxu0 (!%p168_p2), %v2464_v1  ;;  %2160 = vmatprep.subr.bf16.mxu1 (!%p168_p2), %v2465_v2  ;;  %v2470_v7 = vld [vmem:[%s3107_s1 + $0x118] sm:$0xff] (!%p168_p2)   ;;  %v2472_v9 = vld [vmem:[%s3107_s1 + $0x120] sm:$0xff] (!%p168_p2)   ;;  %v2474_v11 = vld [vmem:[%s3107_s1 + $0x128] sm:$0xff] (!%p168_p2)  }
   0x9   : > { %2256 = vmatprep.subr.bf16.mxu0 (!%p168_p2), %v2466_v3  ;;  %v2475_v27 = vld [vmem:[%s3107_s1 + $0x70] sm:$0xff] (!%p168_p2)   ;;  %v2477_v47 = vld [vmem:[%s3107_s1 + $0x78] sm:$0xff] (!%p168_p2)   ;;  %v2479_v54 = vld [vmem:[%s3107_s1] sm:$0xff] (!%p168_p2)  }
   0xa   : > { %v2476_v32 = vld [vmem:[%s3107_s1 + $0x130] sm:$0xff] (!%p168_p2)   ;;  %v2478_v50 = vld [vmem:[%s3107_s1 + $0x138] sm:$0xff] (!%p168_p2)   ;;  %v2480_v56 = vld [vmem:[%s3107_s1 + $0x140] sm:$0xff] (!%p168_p2)  }
   0xb   : > { %2161 = vmatpush3.bf16.msra.mxu1 (!%p168_p2), %v2465_v2  ;;  %v2481_v58 = vld [vmem:[%s3107_s1 + $0x8] sm:$0xff] (!%p168_p2)  }
   0xc   : > { %2257 = vmatpush3.bf16.msra.mxu0 (!%p168_p2), %v2466_v3  ;;  %2162 = vmatprep.subr.bf16.mxu1 (!%p168_p2), %v2467_v4  ;;  %v2482_v60 = vld [vmem:[%s3107_s1 + $0x148] sm:$0xff] (!%p168_p2)  }
   0xd   : > { %s3112_s16 = smov (!%p199_p3, %s1791_s16), 1  ;;  %2258 = vmatprep.subr.bf16.mxu0 %v2468_v5 }
   0xe   : > { %s2454_s7 = smul.u32 80, %s3112_s16  ;;  %s2018_s23 = sshll.u32 %s3112_s16, 5 }
   0xf   : > { %2163 = vmatpush3.bf16.msra.mxu1 %v2467_v4  ;;  %s208_s26 = scalar_lea.vmem %s3108_s2, %s2018_s23  ;;  %s211_s29 = scalar_lea.vmem %s3109_s3, %s3112_s16 }
  0x10   : > { %2259 = vmatpush3.bf16.msra.mxu0 %v2468_v5  ;;  %2164 = vmatprep.subr.bf16.mxu1 %v2469_v6  ;;  %s2621_s14 = scalar_lea.vmem %s3106_s0, %s2454_s7  ;;  %s214_s6 = scalar_lea.vmem %s3110_s4, %s3112_s16 }
  0x11   : > { %2260 = vmatprep.subr.bf16.mxu0 %v2470_v7  ;;  %v2630_v12 = vld [vmem:[%s2621_s14] sm:$0xf]  ;;  %v2633_v13 = vld [vmem:[%s2621_s14 + $0x4] sm:$0x1]  ;;  %v2636_v14 = vld [vmem:[%s2621_s14 + $0x8] sm:$0xf] }
  0x12   : > { %v2639_v15 = vld [vmem:[%s2621_s14 + $0xc] sm:$0x1]  ;;  %v236_v16 = vunpack.c.l.bf16 %v2630_v12  ;;  %v237_v17 = vunpack.c.l.bf16 %v2633_v13  ;;  %v238_v18 = vunpack.c.l.bf16 %v2636_v14  ;;  %v2646_v20 = vld [vmem:[%s2621_s14 + $0x10] sm:$0xf]  ;;  %v2649_v21 = vld [vmem:[%s2621_s14 + $0x14] sm:$0x1] }
  0x13   : > { %2165 = vmatpush3.bf16.msra.mxu1 %v2469_v6  ;;  %v239_v19 = vunpack.c.l.bf16 %v2639_v15  ;;  %v2658_v25 = vld [vmem:[%s2621_s14 + $0x18] sm:$0xf]  ;;  %v240_v26 = vunpack.c.l.bf16 %v2646_v20  ;;  %v2667_v29 = vld [vmem:[%s2621_s14 + $0x1c] sm:$0x1]  ;;  %v241_v30 = vunpack.c.l.bf16 %v2649_v21  ;;  %v2679_v36 = vld [vmem:[%s2621_s14 + $0x20] sm:$0xf]  ;;  %v1859_v37 = vcombine.low %v2636_v14, %v2646_v20 }
  0x14   : > { %2261 = vmatpush3.bf16.msra.mxu0 %v2470_v7  ;;  %2166 = vmatprep.subr.bf16.mxu1 %v2471_v8  ;;  %v293_v22 = vrot.slane %v236_v16, 1  ;;  %v294_v23 = vrot.slane %v237_v17, 1  ;;  %v296_v24 = vrot.slane %v238_v18, 1  ;;  %v242_v31 = vunpack.c.l.bf16 %v2658_v25  ;;  %v2689_v41 = vld [vmem:[%s2621_s14 + $0x24] sm:$0x1]  ;;  %v2483_v7 = vld [vmem:[%s3107_s1 + $0x10] sm:$0xff]  }
  0x15   : > { %2262 = vmatprep.subr.bf16.mxu0 %v2472_v9  ;;  %v297_v28 = vrot.slane %v239_v19, 1  ;;  %v243_v34 = vunpack.c.l.bf16 %v2667_v29  ;;  %v299_v35 = vrot.slane %v240_v26, 1  ;;  %v300_v39 = vrot.slane %v241_v30, 1  ;;  %v2725_v61 = vld [vmem:[%s2621_s14 + $0x28] sm:$0xf] }
  0x16   : > { %v295_v33 = vsel %vm292_vm0, %v293_v22, %v294_v23  ;;  %v302_v40 = vrot.slane %v242_v31, 1  ;;  %v244_v42 = vunpack.c.l.bf16 %v2679_v36  ;;  %v245_v45 = vunpack.c.l.bf16 %v2689_v41  ;;  %v2728_v62 = vld [vmem:[%s2621_s14 + $0x2c] sm:$0x1]  ;;  %v2733_v1 = vld [vmem:[%s2621_s14 + $0x30] sm:$0xf] }
  0x17   : > { %2167 = vmatpush3.bf16.msra.mxu1 %v2471_v8  ;;  %v298_v38 = vsel %vm292_vm0, %v296_v24, %v297_v28  ;;  %v303_v44 = vrot.slane %v243_v34, 1  ;;  %v1860_v46 = vcombine.low %v2658_v25, %v2679_v36  ;;  %v301_v48 = vsel %vm292_vm0, %v299_v35, %v300_v39  ;;  %v2741_v4 = vld [vmem:[%s2621_s14 + $0x34] sm:$0x1]  ;;  %v2766_v23 = vld [vmem:[%s2621_s14 + $0x40] sm:$0xf] }
  0x18   : > { %2263 = vmatpush3.bf16.msra.mxu0 %v2472_v9  ;;  %2168 = vmatprep.subr.bf16.mxu1 %v2473_v10  ;;  %v325_v43 = vpack.c.bf16 %v298_v38, %v295_v33  ;;  %v305_v49 = vrot.slane %v244_v42, 1  ;;  %v895_v51 = vpack.c.bf16 %v301_v48, %v298_v38  ;;  %v306_v52 = vrot.slane %v245_v45, 1  ;;  %v2778_v33 = vld [vmem:[%s2621_s14 + $0x44] sm:$0x1] }
  0x19   : > { %2264 = vmatprep.subr.bf16.mxu0 %v2474_v11  ;;  %v304_v53 = vsel %vm292_vm0, %v302_v40, %v303_v44  ;;  %v246_v63 = vunpack.c.l.bf16 %v2725_v61  ;;  %v247_v0 = vunpack.c.l.bf16 %v2728_v62  ;;  %v576_v2 = vrot.slane %v238_v18, 2  ;;  %v2496_v62 = vld [vmem:[%s3107_s1 + $0x80] sm:$0xff]  }
  0x1a   : > { %2174 = vmatprep.mubr.bf16.mxu1 %v325_v43  ;;  %2270 = vmatprep.mubr.bf16.mxu0 %v895_v51  ;;  %v307_v55 = vsel %vm292_vm0, %v305_v49, %v306_v52  ;;  %v2716_v57 = vpack.c.bf16 %v304_v53, %v301_v48  ;;  %v577_v3 = vrot.slane %v239_v19, 2  ;;  %v248_v5 = vunpack.c.l.bf16 %v2733_v1  ;;  %v2762_v19 = vld [vmem:[%s2621_s14 + $0x3c] sm:$0x1] }
  0x1b   : > { %2169 = vmatpush3.bf16.msra.mxu1 %v2473_v10  ;;  %v896_v59 = vpack.c.bf16 %v307_v55, %v304_v53  ;;  %v1861_v6 = vcombine.low %v2725_v61, %v2733_v1  ;;  %v308_v8 = vrot.slane %v246_v63, 1  ;;  %v309_v9 = vrot.slane %v247_v0, 1  ;;  %v2486_v52 = vld [vmem:[%s3107_s1 + $0x158] sm:$0xff]  }
  0x1c   : > { %2265 = vmatpush3.bf16.msra.mxu0 %v2474_v11  ;;  %2170 = vmatprep.subr.bf16.mxu1 %v2475_v27  ;;  %v249_v10 = vunpack.c.l.bf16 %v2741_v4  ;;  %v2755_v11 = vld [vmem:[%s2621_s14 + $0x38] sm:$0xf]  ;;  %v579_v15 = vrot.slane %v240_v26, 2  ;;  %v311_v18 = vrot.slane %v248_v5, 1  ;;  %v580_v24 = vrot.slane %v241_v30, 2  ;;  %v2499_v4 = vld [vmem:[%s3107_s1 + $0x88] sm:$0xff]  }
  0x1d   : > { %2266 = vmatprep.subr.bf16.mxu0 %v2476_v32  ;;  %v250_v22 = vunpack.c.l.bf16 %v2755_v11  ;;  %v310_v26 = vsel %vm292_vm0, %v308_v8, %v309_v9  ;;  %v252_v35 = vunpack.c.l.bf16 %v2766_v23  ;;  %v253_v30 = vunpack.c.l.bf16 %v2778_v33  ;;  %v2491_v8 = vld [vmem:[%s3107_s1 + $0x30] sm:$0xff]  }
  0x1e   : > { %v312_v28 = vrot.slane %v249_v10, 1  ;;  %v2781_v38 = vpack.c.bf16 %v310_v26, %v307_v55  ;;  %v1862_v44 = vcombine.low %v2755_v11, %v2766_v23  ;;  %v2802_v51 = vsel %vm572_vm1, %v579_v15, %v580_v24  ;;  %v2492_v9 = vld [vmem:[%s3107_s1 + $0x170] sm:$0xff]  }
  0x1f   : > { %2171 = vmatpush3.bf16.msra.mxu1 %v2475_v27  ;;  %v2484_v27 = vld [vmem:[%s3107_s1 + $0x150] sm:$0xff]   ;;  %v314_v21 = vrot.slane %v250_v22, 1  ;;  %v891_v43 = vrot.slane %v252_v35, 1  ;;  %v892_v49 = vrot.slane %v253_v30, 1  ;;  %v582_v15 = vrot.slane %v242_v31, 2  ;;  %v2494_v31 = vld [vmem:[%s3107_s1 + $0x178] sm:$0xff]  }
  0x20   : > { %2267 = vmatpush3.bf16.msra.mxu0 %v2476_v32  ;;  %2172 = vmatprep.subr.bf16.mxu1 %v2477_v47  ;;  %v251_v32 = vunpack.c.l.bf16 %v2762_v19  ;;  %v313_v39 = vsel %vm292_vm0, %v311_v18, %v312_v28  ;;  %v583_v18 = vrot.slane %v243_v34, 2  ;;  %v585_v24 = vrot.slane %v244_v42, 2 }
  0x21   : > { %2268 = vmatprep.subr.bf16.mxu0 %v2478_v50  ;;  %v897_v48 = vpack.c.bf16 %v313_v39, %v310_v26  ;;  %v2812_v55 = vsel %vm292_vm0, %v891_v43, %v892_v49  ;;  %v2493_v26 = vld [vmem:[%s3107_s1 + $0x38] sm:$0xff]   ;;  %v588_v29 = vrot.slane %v246_v63, 2  ;;  %v589_v34 = vrot.slane %v247_v0, 2  ;;  %v2497_v63 = vld [vmem:[%s3107_s1 + $0x180] sm:$0xff]  }
  0x22   : > { %v315_v40 = vrot.slane %v251_v32, 1  ;;  %v2857_v41 = vsel %vm572_vm1, %v582_v15, %v583_v18  ;;  %v592_v28 = vrot.slane %v249_v10, 2  ;;  %v1037_v43 = vrot.slane %v252_v35, 2  ;;  %v2501_v35 = vld [vmem:[%s3107_s1 + $0x90] sm:$0xff]   ;;  %v2506_v15 = vld [vmem:[%s3107_s1 + $0x1a0] sm:$0xff]  }
  0x23   : > { %2173 = vmatpush3.bf16.msra.mxu1 %v2477_v47  ;;  %v2485_v47 = vld [vmem:[%s3107_s1 + $0x18] sm:$0xff]   ;;  %v2880_v10 = vsel %vm572_vm1, %v588_v29, %v589_v34  ;;  %v574_v33 = vrot.slane %v237_v17, 2  ;;  %v2508_v34 = vld [vmem:[%s3107_s1 + $0x1a8] sm:$0xff]  }
  0x24   : > { %2269 = vmatpush3.bf16.msra.mxu0 %v2478_v50  ;;  %2182 = vmatprep.subr.bf16.mxu1 %v2479_v54  ;;  %v2799_v50 = vsel %vm572_vm1, %v576_v2, %v577_v3  ;;  %v316_v53 = vsel %vm292_vm0, %v314_v21, %v315_v40  ;;  %v2488_v2 = vld [vmem:[%s3107_s1 + $0x160] sm:$0xff]   ;;  %v2489_v3 = vld [vmem:[%s3107_s1 + $0x28] sm:$0xff]   ;;  %v595_v40 = vrot.slane %v251_v32, 2  ;;  %v573_v32 = vrot.slane %v236_v16, 2 }
  0x25   : > { %2278 = vmatprep.subr.bf16.mxu0 %v2480_v56  ;;  %v2926_v16 = vcombine.low %v2733_v1, %v2755_v11  ;;  %v2543_v1 = vld [vmem:[%s3107_s1 + $0x238] sm:$0xff]  }
  0x26   : > { %2175 = vmatmul.mubr.bf16.vlgmr.msra.gmra.mrb[0].mxu1 %v2716_v57  ;;  %v575_v17 = vsel %vm572_vm1, %v573_v32, %v574_v33  ;;  %v2534_v32 = vld [vmem:[%s3107_s1 + $0x200] sm:$0xff]   ;;  %v2535_v33 = vld [vmem:[%s3107_s1 + $0x208] sm:$0xff]  }
  0x27   : > { %2183 = vmatpush3.bf16.msra.mxu1 %v2479_v54  ;;  %2271 = vmatmul.mubr.bf16.vlgmr.msra.gmra.mrb[0].mxu0 %v896_v59  ;;  %v2809_v54 = vpack.c.bf16 %v316_v53, %v313_v39  ;;  %v1041_v59 = vpack.c.bf16 %v2802_v51, %v2799_v50  ;;  %v594_v39 = vrot.slane %v250_v22, 2  ;;  %v2898_v22 = vcombine.low %v2679_v36, %v2725_v61  ;;  %v2540_v36 = vld [vmem:[%s3107_s1 + $0x220] sm:$0xff]   ;;  %v2542_v61 = vld [vmem:[%s3107_s1 + $0x230] sm:$0xff]  }
  0x28   : > { %2279 = vmatpush3.bf16.msra.mxu0 %v2480_v56  ;;  %2184 = vmatprep.subr.bf16.mxu1 %v2481_v58  ;;  %v1799_v56 = vcombine.low %v2630_v12, %v2636_v14  ;;  %v2502_v12 = vld [vmem:[%s3107_s1 + $0x190] sm:$0xff]  }
  0x29   : > { %2280 = vmatprep.subr.bf16.mxu0 %v2482_v60  ;;  %2178 = vmatprep.mubr.bf16.mxu1 %v2781_v38  ;;  %v2527_v14 = vld [vmem:[%s3107_s1 + $0xf0] sm:$0xff]  }
  0x2a   : > { %2274 = vmatprep.mubr.bf16.mxu0 %v897_v48  ;;  %v2500_v48 = vld [vmem:[%s3107_s1 + $0x188] sm:$0xff]  }
  0x2b   : > { %2185 = vmatpush3.bf16.msra.mxu1 %v2481_v58  ;;  %v898_v58 = vpack.c.bf16 %v2812_v55, %v316_v53 }
  0x2c   : > { %2281 = vmatpush3.bf16.msra.mxu0 %v2482_v60  ;;  %2186 = vmatprep.subr.bf16.mxu1 %v2483_v7  ;;  %v2487_v60 = vld [vmem:[%s3107_s1 + $0x20] sm:$0xff]  }
  0x2d   : > { %2282 = vmatprep.subr.bf16.mxu0 %v2484_v27 }
  0x2e   : > { %2179 = vmatmul.mubr.bf16.gmra.mrb[4].mxu1 %v2809_v54 }
  0x2f   : > { %2187 = vmatpush3.bf16.msra.mxu1 %v2483_v7  ;;  %2275 = vmatmul.mubr.bf16.gmra.mrb[4].mxu0 %v898_v58  ;;  %v2490_v7 = vld [vmem:[%s3107_s1 + $0x168] sm:$0xff]   ;;  %v2503_v58 = vld [vmem:[%s3107_s1 + $0x98] sm:$0xff]  }
  0x30   : > { %2283 = vmatpush3.bf16.msra.mxu0 %v2484_v27  ;;  %2188 = vmatprep.subr.bf16.mxu1 %v2485_v47  ;;  %v586_v27 = vrot.slane %v245_v45, 2  ;;  %v591_v45 = vrot.slane %v248_v5, 2  ;;  %v1800_v5 = vcombine.low %v2646_v20, %v2658_v25  ;;  %v2529_v20 = vld [vmem:[%s3107_s1 + $0x1f0] sm:$0xff]   ;;  %v2539_v25 = vld [vmem:[%s3107_s1 + $0x218] sm:$0xff]  }
  0x31   : > { %2284 = vmatprep.subr.bf16.mxu0 %v2486_v52  ;;  %2198 = vmatprep.mubr.bf16.mxu1 %v1799_v56 }
  0x32   : > { %2294 = vmatprep.mubr.bf16.mxu0 %v1041_v59  ;;  %v2860_v42 = vsel %vm572_vm1, %v585_v24, %v586_v27  ;;  %v2883_v21 = vsel %vm572_vm1, %v591_v45, %v592_v28  ;;  %v2504_v59 = vld [vmem:[%s3107_s1 + $0x198] sm:$0xff]   ;;  %v2510_v45 = vld [vmem:[%s3107_s1 + $0xb0] sm:$0xff]  }
  0x33   : > { %2189 = vmatpush3.bf16.msra.mxu1 %v2485_v47  ;;  %v1042_v0 = vpack.c.bf16 %v2860_v42, %v2857_v41  ;;  %v1038_v47 = vrot.slane %v253_v30, 2  ;;  %v1043_v19 = vpack.c.bf16 %v2883_v21, %v2880_v10  ;;  %v2910_v30 = vsel %vm572_vm1, %v594_v39, %v595_v40  ;;  %v2511_v28 = vld [vmem:[%s3107_s1 + $0x1b0] sm:$0xff]   ;;  %v2517_v39 = vld [vmem:[%s3107_s1 + $0xc8] sm:$0xff]  }
  0x34   : > { %2285 = vmatpush3.bf16.msra.mxu0 %v2486_v52  ;;  %2190 = vmatprep.subr.bf16.mxu1 %v2487_v60  ;;  %v2916_v52 = vld [vmem:[%s2621_s14 + $0x48] sm:$0xf] }
  0x35   : > { %2286 = vmatprep.subr.bf16.mxu0 %v2488_v2  ;;  %v2913_v49 = vsel %vm572_vm1, %v1037_v43, %v1038_v47  ;;  %v1935_v13 = vcombine.low %v2766_v23, %v2916_v52  ;;  %v254_v56 = vunpack.c.l.bf16 %v2916_v52  ;;  %v2518_v40 = vld [vmem:[%s3107_s1 + $0x1c8] sm:$0xff]   ;;  %v2993_v43 = vpack.c.bf16 %v2880_v10, %v2860_v42  ;;  %v2521_v10 = vld [vmem:[%s3107_s1 + $0xd8] sm:$0xff]  }
  0x36   : > { %v1044_v53 = vpack.c.bf16 %v2913_v49, %v2910_v30  ;;  %v3007_v42 = vpack.c.bf16 %v2910_v30, %v2883_v21  ;;  %v2522_v47 = vld [vmem:[%s3107_s1 + $0x1d8] sm:$0xff]   ;;  %v2523_v21 = vld [vmem:[%s3107_s1 + $0xe0] sm:$0xff]  }
  0x37   : > { %2191 = vmatpush3.bf16.msra.mxu1 %v2487_v60  ;;  %v605_v60 = vpack.c.bf16 %v2799_v50, %v575_v17 }
  0x38   : > { %2287 = vmatpush3.bf16.msra.mxu0 %v2488_v2  ;;  %2192 = vmatprep.subr.bf16.mxu1 %v2489_v3  ;;  %v235_v2 = vld [vmem:[%s2621_s14 + $0x4c] sm:$0x1] }
  0x39   : > { %2288 = vmatprep.subr.bf16.mxu0 %v2490_v7 }
  0x3b   : > { %2193 = vmatpush3.bf16.msra.mxu1 %v2489_v3  ;;  %v1324_v3 = vrot.slane %v254_v56, 1 }
  0x3c   : > { %2289 = vmatpush3.bf16.msra.mxu0 %v2490_v7  ;;  %2194 = vmatprep.subr.bf16.mxu1 %v2491_v8  ;;  %v1467_v7 = vrot.slane %v254_v56, 2 }
  0x3d   : > { %2290 = vmatprep.subr.bf16.mxu0 %v2492_v9 }
  0x3f   : > { %2195 = vmatpush3.bf16.msra.mxu1 %v2491_v8  ;;  %v255_v8 = vunpack.c.l.bf16 %v235_v2 }
  0x40   : > { %2291 = vmatpush3.bf16.msra.mxu0 %v2492_v9  ;;  %2196 = vmatprep.subr.bf16.mxu1 %v2493_v26  ;;  %v2505_v9 = vld [vmem:[%s3107_s1 + $0xa0] sm:$0xff]  }
  0x41   : > { %2292 = vmatprep.subr.bf16.mxu0 %v2494_v31  ;;  %v1325_v50 = vrot.slane %v255_v8, 1  ;;  %v1468_v18 = vrot.slane %v255_v8, 2 }
  0x43   : > { %2197 = vmatpush3.bf16.msra.mxu1 %v2493_v26  ;;  %v2948_v24 = vsel %vm292_vm0, %v1324_v3, %v1325_v50  ;;  %v2951_v27 = vsel %vm572_vm1, %v1467_v7, %v1468_v18  ;;  %v2507_v26 = vld [vmem:[%s3107_s1 + $0xa8] sm:$0xff]  }
  0x44   : > { %2293 = vmatpush3.bf16.msra.mxu0 %v2494_v31  ;;  %2206 = vmatprep.subr.bf16.mxu1 %v2496_v62  ;;  %v1328_v31 = vpack.c.bf16 %v2948_v24, %v2812_v55  ;;  %v1471_v29 = vpack.c.bf16 %v2951_v27, %v2913_v49 }
  0x45   : > { %2302 = vmatprep.subr.bf16.mxu0 %v2497_v63 }
  0x46   : > { %2199 = vmatmul.mubr.bf16.vlgmr.msra.gmra.mrb[0].mxu1 %v1800_v5 }
  0x47   : > { %2207 = vmatpush3.bf16.msra.mxu1 %v2496_v62  ;;  %2295 = vmatmul.mubr.bf16.vlgmr.msra.gmra.mrb[0].mxu0 %v1042_v0  ;;  %v2513_v62 = vld [vmem:[%s3107_s1 + $0xb8] sm:$0xff]   ;;  %v2515_v0 = vld [vmem:[%s3107_s1 + $0xc0] sm:$0xff]  }
  0x48   : > { %2303 = vmatpush3.bf16.msra.mxu0 %v2497_v63  ;;  %2208 = vmatprep.subr.bf16.mxu1 %v2499_v4  ;;  %v2514_v63 = vld [vmem:[%s3107_s1 + $0x1b8] sm:$0xff]  }
  0x49   : > { %2304 = vmatprep.subr.bf16.mxu0 %v2500_v48  ;;  %2202 = vmatprep.mubr.bf16.mxu1 %v2898_v22 }
  0x4a   : > { %2298 = vmatprep.mubr.bf16.mxu0 %v1043_v19  ;;  %v2526_v19 = vld [vmem:[%s3107_s1 + $0x1e8] sm:$0xff]  }
  0x4b   : > { %2209 = vmatpush3.bf16.msra.mxu1 %v2499_v4  ;;  %v2983_v4 = vpack.c.bf16 %v2857_v41, %v2802_v51  ;;  %v2519_v51 = vld [vmem:[%s3107_s1 + $0xd0] sm:$0xff]  }
  0x4c   : > { %2305 = vmatpush3.bf16.msra.mxu0 %v2500_v48  ;;  %2210 = vmatprep.subr.bf16.mxu1 %v2501_v35  ;;  %v2520_v41 = vld [vmem:[%s3107_s1 + $0x1d0] sm:$0xff]   ;;  %v2524_v48 = vld [vmem:[%s3107_s1 + $0x1e0] sm:$0xff]  }
  0x4d   : > { %2306 = vmatprep.subr.bf16.mxu0 %v2502_v12 }
  0x4e   : > { %2203 = vmatmul.mubr.bf16.gmra.mrb[4].mxu1 %v2926_v16 }
  0x4f   : > { %2211 = vmatpush3.bf16.msra.mxu1 %v2501_v35  ;;  %2299 = vmatmul.mubr.bf16.gmra.mrb[4].mxu0 %v1044_v53  ;;  %v2538_v35 = vld [vmem:[%s3107_s1 + $0x210] sm:$0xff]  }
  0x50   : > { %2307 = vmatpush3.bf16.msra.mxu0 %v2502_v12  ;;  %2212 = vmatprep.subr.bf16.mxu1 %v2503_v58 }
  0x51   : > { %2308 = vmatprep.subr.bf16.mxu0 %v2504_v59  ;;  %2222 = vmatprep.mubr.bf16.mxu1 %v605_v60 }
  0x52   : > { %2318 = vmatprep.mubr.bf16.mxu0 %v1800_v5  ;;  %v2516_v5 = vld [vmem:[%s3107_s1 + $0x1c0] sm:$0xff]  }
  0x53   : > { %2213 = vmatpush3.bf16.msra.mxu1 %v2503_v58 }
  0x54   : > { %2309 = vmatpush3.bf16.msra.mxu0 %v2504_v59  ;;  %2214 = vmatprep.subr.bf16.mxu1 %v2505_v9 }
  0x55   : > { %2310 = vmatprep.subr.bf16.mxu0 %v2506_v15 }
  0x57   : > { %2215 = vmatpush3.bf16.msra.mxu1 %v2505_v9 }
  0x58   : > { %2311 = vmatpush3.bf16.msra.mxu0 %v2506_v15  ;;  %2216 = vmatprep.subr.bf16.mxu1 %v2507_v26 }
  0x59   : > { %2312 = vmatprep.subr.bf16.mxu0 %v2508_v34 }
  0x5b   : > { %2217 = vmatpush3.bf16.msra.mxu1 %v2507_v26 }
  0x5c   : > { %2313 = vmatpush3.bf16.msra.mxu0 %v2508_v34  ;;  %2218 = vmatprep.subr.bf16.mxu1 %v2510_v45 }
  0x5d   : > { %2314 = vmatprep.subr.bf16.mxu0 %v2511_v28 }
  0x5f   : > { %2219 = vmatpush3.bf16.msra.mxu1 %v2510_v45 }
  0x60   : > { %2315 = vmatpush3.bf16.msra.mxu0 %v2511_v28  ;;  %2220 = vmatprep.subr.bf16.mxu1 %v2513_v62 }
  0x61   : > { %2316 = vmatprep.subr.bf16.mxu0 %v2514_v63 }
  0x63   : > { %2221 = vmatpush3.bf16.msra.mxu1 %v2513_v62 }
  0x64   : > { %2317 = vmatpush3.bf16.msra.mxu0 %v2514_v63  ;;  %2230 = vmatprep.subr.bf16.mxu1 %v2515_v0 }
  0x65   : > { %2326 = vmatprep.subr.bf16.mxu0 %v2516_v5 }
  0x66   : > { %2223 = vmatmul.mubr.bf16.vlgmr.msra.gmra.mrb[0].mxu1 %v2983_v4 }
  0x67   : > { %2231 = vmatpush3.bf16.msra.mxu1 %v2515_v0  ;;  %2319 = vmatmul.mubr.bf16.vlgmr.msra.gmra.mrb[0].mxu0 %v2898_v22  ;;  %v2525_v22 = vld [vmem:[%s3107_s1 + $0xe8] sm:$0xff]  }
  0x68   : > { %2327 = vmatpush3.bf16.msra.mxu0 %v2516_v5  ;;  %2232 = vmatprep.subr.bf16.mxu1 %v2517_v39 }
  0x69   : > { %2328 = vmatprep.subr.bf16.mxu0 %v2518_v40  ;;  %2226 = vmatprep.mubr.bf16.mxu1 %v2993_v43 }
  0x6a   : > { %2322 = vmatprep.mubr.bf16.mxu0 %v2926_v16 }
  0x6b   : > { %2233 = vmatpush3.bf16.msra.mxu1 %v2517_v39 }
  0x6c   : > { %2329 = vmatpush3.bf16.msra.mxu0 %v2518_v40  ;;  %2234 = vmatprep.subr.bf16.mxu1 %v2519_v51 }
  0x6d   : > { %2330 = vmatprep.subr.bf16.mxu0 %v2520_v41 }
  0x6e   : > { %2227 = vmatmul.mubr.bf16.gmra.mrb[4].mxu1 %v3007_v42 }
  0x6f   : > { %2235 = vmatpush3.bf16.msra.mxu1 %v2519_v51  ;;  %2323 = vmatmul.mubr.bf16.gmra.mrb[4].mxu0 %v1935_v13 }
  0x70   : > { %2331 = vmatpush3.bf16.msra.mxu0 %v2520_v41  ;;  %2236 = vmatprep.subr.bf16.mxu1 %v2521_v10 }
  0x71   : > { %2332 = vmatprep.subr.bf16.mxu0 %v2522_v47  ;;  %2246 = vmatprep.mubr.bf16.mxu1 %v1859_v37  ;;  %v2530_v37 = vld [vmem:[%s3107_s1 + $0xf8] sm:$0xff]  }
  0x72   : > { %2342 = vmatprep.mubr.bf16.mxu0 %v2716_v57  ;;  %v2531_v57 = vld [vmem:[%s3107_s1 + $0x1f8] sm:$0xff]  }
  0x73   : > { %2237 = vmatpush3.bf16.msra.mxu1 %v2521_v10 }
  0x74   : > { %2333 = vmatpush3.bf16.msra.mxu0 %v2522_v47  ;;  %2238 = vmatprep.subr.bf16.mxu1 %v2523_v21 }
  0x75   : > { %2334 = vmatprep.subr.bf16.mxu0 %v2524_v48 }
  0x77   : > { %2239 = vmatpush3.bf16.msra.mxu1 %v2523_v21 }
  0x78   : > { %2335 = vmatpush3.bf16.msra.mxu0 %v2524_v48  ;;  %2240 = vmatprep.subr.bf16.mxu1 %v2525_v22 }
  0x79   : > { %2336 = vmatprep.subr.bf16.mxu0 %v2526_v19 }
  0x7b   : > { %2241 = vmatpush3.bf16.msra.mxu1 %v2525_v22 }
  0x7c   : > { %2337 = vmatpush3.bf16.msra.mxu0 %v2526_v19  ;;  %2242 = vmatprep.subr.bf16.mxu1 %v2527_v14 }
  0x7d   : > { %2338 = vmatprep.subr.bf16.mxu0 %v2529_v20 }
  0x7f   : > { %2243 = vmatpush3.bf16.msra.mxu1 %v2527_v14 }
  0x80   : > { %2339 = vmatpush3.bf16.msra.mxu0 %v2529_v20  ;;  %2244 = vmatprep.subr.bf16.mxu1 %v2530_v37 }
  0x81   : > { %2340 = vmatprep.subr.bf16.mxu0 %v2531_v57 }
  0x83   : > { %2245 = vmatpush3.bf16.msra.mxu1 %v2530_v37 }
  0x84   : > { %2341 = vmatpush3.bf16.msra.mxu0 %v2531_v57  ;;  %2374 = vmatprep.subr.bf16.mxu1 %v2534_v32 }
  0x85   : > { %2350 = vmatprep.subr.bf16.mxu0 %v2534_v32 }
  0x86   : > { %2247 = vmatmul.mubr.bf16.vlgmr.msra.gmra.mrb[0].mxu1 %v1860_v46  ;;  %v2541_v46 = vld [vmem:[%s3107_s1 + $0x228] sm:$0xff]  }
  0x87   : > { %2343 = vmatmul.mubr.bf16.vlgmr.msra.gmra.mrb[0].mxu0 %v2781_v38  ;;  %2382 = vmatpush3.bf16.msra.mxu1 %v2534_v32 }
  0x88   : > { %2351 = vmatpush3.bf16.msra.mxu0 %v2534_v32  ;;  %2375 = vmatprep.subr.bf16.mxu1 %v2535_v33 }
  0x89   : > { %2352 = vmatprep.subr.bf16.mxu0 %v2535_v33  ;;  %2250 = vmatprep.mubr.bf16.mxu1 %v1861_v6 }
  0x8a   : > { %2346 = vmatprep.mubr.bf16.mxu0 %v2809_v54 }
  0x8b   : > { %2383 = vmatpush3.bf16.msra.mxu1 %v2535_v33 }
  0x8c   : > { %2353 = vmatpush3.bf16.msra.mxu0 %v2535_v33  ;;  %2376 = vmatprep.subr.bf16.mxu1 %v2538_v35 }
  0x8d   : > { %2354 = vmatprep.subr.bf16.mxu0 %v2538_v35 }
  0x8e   : > { %2251 = vmatmul.mubr.bf16.gmra.mrb[4].mxu1 %v1862_v44 }
  0x8f   : > { %2347 = vmatmul.mubr.bf16.gmra.mrb[4].mxu0 %v1328_v31  ;;  %2384 = vmatpush3.bf16.msra.mxu1 %v2538_v35 }
  0x90   : > { %2355 = vmatpush3.bf16.msra.mxu0 %v2538_v35  ;;  %2377 = vmatprep.subr.bf16.mxu1 %v2539_v25 }
  0x91   : > { %2356 = vmatprep.subr.bf16.mxu0 %v2539_v25  ;;  %2366 = vmatprep.mubr.bf16.mxu0 %v2983_v4 }
  0x92   : > { %2370 = vmatprep.mubr.bf16.mxu1 %v3007_v42 }
  0x93   : > { %2385 = vmatpush3.bf16.msra.mxu1 %v2539_v25 }
  0x94   : > { %2357 = vmatpush3.bf16.msra.mxu0 %v2539_v25  ;;  %2378 = vmatprep.subr.bf16.mxu1 %v2540_v36 }
  0x95   : > { %2358 = vmatprep.subr.bf16.mxu0 %v2540_v36 }
  0x97   : > { %2386 = vmatpush3.bf16.msra.mxu1 %v2540_v36 }
  0x98   : > { %2359 = vmatpush3.bf16.msra.mxu0 %v2540_v36  ;;  %2379 = vmatprep.subr.bf16.mxu1 %v2541_v46 }
  0x99   : > { %2360 = vmatprep.subr.bf16.mxu0 %v2541_v46 }
  0x9b   : > { %2387 = vmatpush3.bf16.msra.mxu1 %v2541_v46 }
  0x9c   : > { %2361 = vmatpush3.bf16.msra.mxu0 %v2541_v46  ;;  %2380 = vmatprep.subr.bf16.mxu1 %v2542_v61 }
  0x9d   : > { %2362 = vmatprep.subr.bf16.mxu0 %v2542_v61 }
  0x9f   : > { %2388 = vmatpush3.bf16.msra.mxu1 %v2542_v61 }
  0xa0   : > { %2363 = vmatpush3.bf16.msra.mxu0 %v2542_v61  ;;  %2381 = vmatprep.subr.bf16.mxu1 %v2543_v1 }
  0xa1   : > { %2364 = vmatprep.subr.bf16.mxu0 %v2543_v1 }
  0xa3   : > { %2389 = vmatpush3.bf16.msra.mxu1 %v2543_v1 }
  0xa4   : > { %2365 = vmatpush3.bf16.msra.mxu0 %v2543_v1 }
  0xa6   : > { %2371 = vmatmul.mubr.bf16.vlgmr.msra.gmra.mrb[8].mxu1 %v1471_v29 }
  0xa7   : > { %2367 = vmatmul.mubr.bf16.vlgmr.msra.gmra.mrb[0].mxu0 %v2993_v43 }
 0x159   : > { %v2248_v6 = vpop.f32.mrb[0].mxu1 }
 0x15a   : > { %v850_v11 = vpop.f32.mrb[1].mxu1 }
 0x15b   : > { %v2249_v23 = vpop.f32.mrb[2].mxu1 }
 0x15c   : > { %v853_v38 = vpop.f32.mrb[3].mxu1 }
 0x161   : > { %v2252_v44 = vpop.f32.mrb[4].mxu1 }
 0x162   : > { %v2348_v54 = vpop.f32.mrb[4].mxu0  ;;  %v866_v55 = vpop.f32.mrb[5].mxu1 }
 0x163   : > { %v2394_v30 = vadd.f32 %v2348_v54, %v2252_v44  ;;  %v1444_v52 = vpop.f32.mrb[5].mxu0  ;;  %v2253_v12 = vpop.f32.mrb[6].mxu1 }
 0x164   : > { %v2396_v13 = vadd.f32 %v1444_v52, %v866_v55  ;;  %v2349_v16 = vpop.f32.mrb[6].mxu0  ;;  %v869_v17 = vpop.f32.mrb[7].mxu1 }
 0x165   : > { %v2398_v53 = vadd.f32 %v2349_v16, %v2253_v12  ;;  %v1447_v56 = vpop.f32.mrb[7].mxu0 }
 0x166   : > { %v2400_v49 = vadd.f32 %v1447_v56, %v869_v17 }
 0x179   : > { %v2372_v58 = vpop.f32.mrb[8].mxu1 }
 0x17a   : > { %v2368_v59 = vpop.f32.mrb[0].mxu0  ;;  %v2395_v60 = vadd.f32 %v2394_v30, %v2372_v58  ;;  %v1587_v2 = vpop.f32.mrb[9].mxu1 }
 0x17b   : > { %v2390_v3 = vadd.f32 %v2368_v59, %v2248_v6  ;;  %v1571_v7 = vpop.f32.mrb[1].mxu0  ;;  %v2397_v8 = vadd.f32 %v2396_v13, %v1587_v2  ;;  %v2373_v9 = vpop.f32.mrb[10].mxu1 }
 0x17c   : > { %v2391_v15 = vadd.f32 %v1571_v7, %v850_v11  ;;  %v2369_v50 = vpop.f32.mrb[2].mxu0  ;;  %v2399_v18 = vadd.f32 %v2398_v53, %v2373_v9  ;;  %v1590_v24 = vpop.f32.mrb[11].mxu1  ;;  %v1670_v19 = vmul.f32 %v2395_v60, %v2395_v60 }
 0x17d   : > { %v2392_v27 = vadd.f32 %v2369_v50, %v2249_v23  ;;  %v1574_v26 = vpop.f32.mrb[3].mxu0  ;;  %v2401_v31 = vadd.f32 %v2400_v49, %v1590_v24  ;;  %v1666_v4 = vmul.f32 %v2390_v3, %v2390_v3  ;;  %v1668_v42 = vmul.f32 %v2397_v8, %v2397_v8 }
 0x17e   : > { %v2045_v29 = vpack.c.bf16 %v2399_v18, %v2395_v60  ;;  %v2393_v34 = vadd.f32 %v1574_v26, %v853_v38  ;;  %v1664_v62 = vmul.f32 %v2391_v15, %v2391_v15  ;;  %v1671_v37 = vmul.f32 %v2399_v18, %v2399_v18 }
 0x17f   : > { %v2035_v45 = vpack.c.bf16 %v2392_v27, %v2390_v3  ;;  %v2040_v28 = vpack.c.bf16 %v2401_v31, %v2397_v8  ;;  %v1667_v43 = vmul.f32 %v2392_v27, %v2392_v27  ;;  %v1669_v48 = vmul.f32 %v2401_v31, %v2401_v31 }
 0x180   : > { %2049 = vst [vmem:[%s208_s26 + $0x18] sm:$0xff] %v2045_v29   ;;  %v2030_v63 = vpack.c.bf16 %v2393_v34, %v2391_v15  ;;  %v1650_v0 = vadd.f32 %v2393_v34, %v2391_v15  ;;  %v1665_v5 = vmul.f32 %v2393_v34, %v2393_v34 }
 0x181   : > { %2047 = vst [vmem:[%s208_s26 + $0x8] sm:$0xff] %v2035_v45   ;;  %2048 = vst [vmem:[%s208_s26 + $0x10] sm:$0xff] %v2040_v28  }
 0x182   : > { %2031 = vst [vmem:[%s208_s26] sm:$0xff] %v2030_v63   ;;  %v1651_v39 = vadd.f32 %v2390_v3, %v1650_v0  ;;  %v1672_v40 = vadd.f32 %v1665_v5, %v1664_v62 }
 0x184   : > { %v1673_v51 = vadd.f32 %v1672_v40, %v1666_v4  ;;  %v1652_v41 = vadd.f32 %v2392_v27, %v1651_v39 }
 0x186   : > { %v1653_v10 = vadd.f32 %v2397_v8, %v1652_v41  ;;  %v1674_v47 = vadd.f32 %v1673_v51, %v1667_v43 }
 0x188   : > { %v1654_v21 = vadd.f32 %v2401_v31, %v1653_v10  ;;  %v1675_v22 = vadd.f32 %v1674_v47, %v1668_v42 }
 0x18a   : > { %v1655_v14 = vadd.f32 %v2395_v60, %v1654_v21  ;;  %v1676_v20 = vadd.f32 %v1675_v22, %v1669_v48 }
 0x18c   : > { %v1656_v57 = vadd.f32 %v2399_v18, %v1655_v14  ;;  %v1677_v32 = vadd.f32 %v1676_v20, %v1670_v19 }
 0x18e   : > { %v1657_v33 = vrot.slane %v1656_v57, 4  ;;  %v1678_v35 = vadd.f32 %v1677_v32, %v1671_v37 }
 0x190   : > { %v1658_v25 = vadd.f32 %v1657_v33, %v1656_v57  ;;  %v1679_v36 = vrot.slane %v1678_v35, 4 }
 0x192   : > { %v1659_v46 = vrot.slane %v1658_v25, 2  ;;  %v1680_v61 = vadd.f32 %v1679_v36, %v1678_v35 }
 0x194   : > { %v1660_v1 = vadd.f32 %v1659_v46, %v1658_v25  ;;  %v1681_v6 = vrot.slane %v1680_v61, 2 }
 0x196   : > { %v1661_v11 = vrot.slane %v1660_v1, 1  ;;  %v1682_v23 = vadd.f32 %v1681_v6, %v1680_v61 }
 0x198   : > { %v1662_v38 = vadd.f32 %v1661_v11, %v1660_v1  ;;  %v1683_v44 = vrot.slane %v1682_v23, 1 }
 0x19a   : > { %1663 = vst [vmem:[%s211_s29] sm:$0x1] %v1662_v38  ;;  %v1684_v54 = vadd.f32 %v1683_v44, %v1682_v23 }
 0x19c   : > { %1685 = vst [vmem:[%s214_s6] sm:$0x1] %v1684_v54 }
 0x19d PF: > { %s15_s15 = sadd.s32 1, %s2550_s15  }
 0x19e   : > { %p12_p4 = scmp.ge.s32.totalorder %s15_s15, 4  }
 0x1a0   :  { %14 = sbr.rel (!%p12_p4) target bundleno = 1 (0x1), region = 90 }

// kernel: resblock_forward.6
= control target key start
LH: loop header
LB: loop body
LE: loop exit
PB: predicated region body
PF: predicated region fallthrough
CT: control target
= control target key end

     0   :  { %s2875_s24 = smov 0   ;;  %s3463_s0 = inlined_call_operand.vmem [shape: bf16[2,10,10,128], index: 0, kind: input, shape index: {}]   ;;  %s3464_s1 = inlined_call_operand.vmem [shape: bf16[9,128,128], index: 1, kind: input, shape index: {}]   ;;  %s3465_s2 = inlined_call_operand.vmem [shape: f32[1,128], index: 2, kind: input, shape index: {}]   ;;  %s3466_s3 = inlined_call_operand.vmem [shape: f32[1,128], index: 3, kind: input, shape index: {}]   ;;  %s3467_s4 = inlined_call_operand.vmem [shape: f32[10,10,1], index: 4, kind: input, shape index: {}]   ;;  %s3468_s5 = inlined_call_operand.vmem [shape: bf16[2,64,128], index: 5, kind: output, shape index: {0}]   ;;  %s3469_s6 = inlined_call_operand.vmem [shape: f32[2,1,128], index: 6, kind: output, shape index: {1}]   ;;  %s3470_s7 = inlined_call_operand.vmem [shape: f32[2,1,128], index: 7, kind: output, shape index: {2}]  }
   0x1 LB: > { %s2086_s25 = sadd.s32 4294967295, %s2832_s24   ;;  %p2090_p0 = scmp.ge.s32.totalorder %s2832_s24, 1  ;;  %s2832_s24 = sphi %s2875_s24, %s18_s24  }
   0x2   : > { %p242_p1 = scmp.lt.s32.totalorder %s2832_s24, 3 }
   0x4   : > { %p243_p2 = pnand %p2090_p0, %p242_p1 }
   0x5   : > { %v415_v0 = vld [vmem:[%s3467_s4 + $0x20] sm:$0xff] (!%p243_p2)  ;;  %v413_v1 = vld [vmem:[%s3467_s4 + $0x10] sm:$0xff] (!%p243_p2)  ;;  %v2834_v2 = vmov (!%p243_p2), 0   ;;  %v416_v3 = vld [vmem:[%s3467_s4 + $0x28] sm:$0x3] (!%p243_p2)  ;;  %p280_p3 = scmp.lt.s32.totalorder (!%p243_p2), %s2086_s25, 1 }
   0x6   : > { %246 = sbr.rel (%p243_p2) target bundleno = 528 (0x210), region = 40  ;;  %2753 = vset.pattern.permute.xlu1 (!%p243_p2), %v2834_v2  ;;  %2752 = vset.pattern.permute.xlu0 (!%p243_p2), %v2834_v2  ;;  %v414_v4 = vld [vmem:[%s3467_s4 + $0x18] sm:$0x3] (!%p243_p2)  ;;  %v417_v6 = vld [vmem:[%s3467_s4 + $0x30] sm:$0xff] (!%p243_p2)  ;;  %v2754_v7 = vld [vmem:[%s3464_s1 + $0x100] sm:$0xff] (!%p243_p2)   ;;  %vm587_vm0 = vcmask (!%p243_p2), 1046528  }
   0x7   : > { %453 = vperm.xlu1 (!%p243_p2), %2753, %v415_v0   ;;  %443 = vperm.xlu0 (!%p243_p2), %2752, %v413_v1   ;;  %v418_v5 = vld [vmem:[%s3467_s4 + $0x38] sm:$0x3] (!%p243_p2)  ;;  %v2755_v8 = vld [vmem:[%s3464_s1 + $0x108] sm:$0xff] (!%p243_p2)   ;;  %v2756_v10 = vld [vmem:[%s3464_s1 + $0x40] sm:$0xff] (!%p243_p2)   ;;  %vm867_vm1 = vcmask (!%p243_p2), 1045504  }
   0x8   : > { %v420_v9 = vld [vmem:[%s3467_s4 + $0x48] sm:$0x3] (!%p243_p2)  ;;  %2542 = vmatprep.subr.bf16.mxu0 (!%p243_p2), %v2754_v7  ;;  %v419_v11 = vld [vmem:[%s3467_s4 + $0x40] sm:$0xff] (!%p243_p2)  ;;  %2446 = vmatprep.subr.bf16.mxu1 (!%p243_p2), %v2756_v10  ;;  %v2757_v13 = vld [vmem:[%s3464_s1 + $0x110] sm:$0xff] (!%p243_p2)  }
   0x9   : > { %2543 = vmatpush3.bf16.msra.mxu0 (!%p243_p2), %v2754_v7  ;;  %v2758_v12 = vld [vmem:[%s3464_s1 + $0x48] sm:$0xff] (!%p243_p2)   ;;  %2447 = vmatpush3.bf16.msra.mxu1 (!%p243_p2), %v2756_v10  ;;  %v2760_v14 = vld [vmem:[%s3464_s1 + $0x50] sm:$0xff] (!%p243_p2)   ;;  %v411_v16 = vld [vmem:[%s3467_s4] sm:$0xff] (!%p243_p2) }
   0xa   : > { %2544 = vmatprep.subr.bf16.mxu0 (!%p243_p2), %v2755_v8  ;;  %2448 = vmatprep.subr.bf16.mxu1 (!%p243_p2), %v2758_v12  ;;  %v412_v15 = vld [vmem:[%s3467_s4 + $0x8] sm:$0x3] (!%p243_p2)  ;;  %v2759_v17 = vld [vmem:[%s3464_s1 + $0x118] sm:$0xff] (!%p243_p2)   ;;  %v421_v20 = vld [vmem:[%s3467_s4 + $0x50] sm:$0xff] (!%p243_p2) }
   0xb   : > { %458 = vperm.xlu1 (!%p243_p2), %2753, %v416_v3   ;;  %448 = vperm.xlu0 (!%p243_p2), %2752, %v414_v4   ;;  %v2762_v18 = vld [vmem:[%s3464_s1 + $0x58] sm:$0xff] (!%p243_p2)   ;;  %v2761_v21 = vld [vmem:[%s3464_s1 + $0x120] sm:$0xff] (!%p243_p2)   ;;  %v424_v23 = vld [vmem:[%s3467_s4 + $0x68] sm:$0x3] (!%p243_p2) }
   0xc   : > { %v422_v19 = vld [vmem:[%s3467_s4 + $0x58] sm:$0x3] (!%p243_p2)  ;;  %v2764_v22 = vld [vmem:[%s3464_s1 + $0x60] sm:$0xff] (!%p243_p2)   ;;  %v2763_v25 = vld [vmem:[%s3464_s1 + $0x128] sm:$0xff] (!%p243_p2)  }
   0xd   : > { %2545 = vmatpush3.bf16.msra.mxu0 %v2755_v8  ;;  %2449 = vmatpush3.bf16.msra.mxu1 %v2758_v12  ;;  %v423_v24 = vld [vmem:[%s3467_s4 + $0x60] sm:$0xff]  ;;  %s3472_s25 = smov (!%p280_p3, %s2086_s25), 1  ;;  %v2766_v26 = vld [vmem:[%s3464_s1 + $0x68] sm:$0xff]   ;;  %v426_v27 = vld [vmem:[%s3467_s4 + $0x78] sm:$0x3] }
   0xe   : > { %2546 = vmatprep.subr.bf16.mxu0 %v2757_v13  ;;  %2450 = vmatprep.subr.bf16.mxu1 %v2760_v14  ;;  %v425_v28 = vld [vmem:[%s3467_s4 + $0x70] sm:$0xff]  ;;  %s2742_s19 = smul.u32 80, %s3472_s25  ;;  %v428_v31 = vld [vmem:[%s3467_s4 + $0x88] sm:$0x3]  ;;  %v427_v32 = vld [vmem:[%s3467_s4 + $0x80] sm:$0xff]  ;;  %s2306_s29 = sshll.u32 %s3472_s25, 5 }
   0xf   : > { %468 = vperm.xlu1 %2753, %v418_v5   ;;  %463 = vperm.xlu0 %2752, %v417_v6   ;;  %v2765_v29 = vld [vmem:[%s3464_s1 + $0x130] sm:$0xff]   ;;  %v2767_v33 = vld [vmem:[%s3464_s1 + $0x138] sm:$0xff]   ;;  %v3009_v38 = vld [vmem:[%s3464_s1 + $0x140] sm:$0xff]   ;;  %s289_s9 = scalar_lea.vmem %s3468_s5, %s2306_s29  ;;  %s292_s12 = scalar_lea.vmem %s3469_s6, %s3472_s25 }
  0x10   : > { %v2768_v30 = vld [vmem:[%s3464_s1 + $0x70] sm:$0xff]   ;;  %v430_v34 = vld [vmem:[%s3467_s4 + $0x98] sm:$0x3]  ;;  %s2995_s11 = scalar_lea.vmem %s3463_s0, %s2742_s19  ;;  %v3016_v41 = vld [vmem:[%s3465_s2] ss:$0 sm:$0xff]  ;;  %s295_s15 = scalar_lea.vmem %s3470_s7, %s3472_s25 }
  0x11   : > { %2547 = vmatpush3.bf16.msra.mxu0 %v2757_v13  ;;  %2451 = vmatpush3.bf16.msra.mxu1 %v2760_v14  ;;  %v2770_v35 = vld [vmem:[%s3464_s1 + $0x78] sm:$0xff]   ;;  %v429_v36 = vld [vmem:[%s3467_s4 + $0x90] sm:$0xff]  ;;  %v3004_v37 = vld [vmem:[%s2995_s11 + $0x40] ss:$8 sps:$4 sm:$0xff]  }
  0x12   : > { %2548 = vmatprep.subr.bf16.mxu0 %v2759_v17  ;;  %2452 = vmatprep.subr.bf16.mxu1 %v2762_v18  ;;  %v316_v39 = vld [vmem:[%s2995_s11 + $0x4c] sm:$0x1]  ;;  %v335_v40 = vunpack.c.h.bf16 %v3004_v37  ;;  %v3021_v42 = vld [vmem:[%s3464_s1] sm:$0xff]   ;;  %v301_v49 = vld [vmem:[%s2995_s11 + $0x8] ss:$8 sps:$4 sm:$0xff]  }
  0x13   : > { %478 = vperm.xlu1 %2753, %v420_v9   ;;  %473 = vperm.xlu0 %2752, %v419_v11   ;;  %v336_v43 = vunpack.c.l.bf16 %v316_v39  ;;  %v3027_v45 = vld [vmem:[%s3466_s3] ss:$0 sm:$0xff]  ;;  %v302_v50 = vld [vmem:[%s2995_s11 + $0x14] sm:$0x1]  ;;  %v321_v51 = vunpack.c.h.bf16 %v301_v49  ;;  %v319_v52 = vunpack.c.l.bf16 %v301_v49  ;;  %v300_v53 = vld [vmem:[%s2995_s11 + $0xc] sm:$0x1] }
  0x14   : > { %v362_v44 = vmul.f32 %v3016_v41, %v335_v40  ;;  %v322_v54 = vunpack.c.l.bf16 %v302_v50  ;;  %v320_v55 = vunpack.c.l.bf16 %v300_v53  ;;  %v304_v58 = vld [vmem:[%s2995_s11 + $0x1c] sm:$0x1]  ;;  %v303_v59 = vld [vmem:[%s2995_s11 + $0x18] ss:$8 sps:$4 sm:$0xff]   ;;  %v306_v2 = vld [vmem:[%s2995_s11 + $0x24] sm:$0x1] }
  0x15   : > { %2549 = vmatpush3.bf16.msra.mxu0 %v2759_v17  ;;  %2453 = vmatpush3.bf16.msra.mxu1 %v2762_v18  ;;  %v363_v46 = vmul.f32 %v3016_v41, %v336_v43  ;;  %v348_v56 = vmul.f32 %v3016_v41, %v321_v51  ;;  %v346_v57 = vmul.f32 %v3016_v41, %v319_v52  ;;  %v324_v0 = vunpack.c.l.bf16 %v304_v58  ;;  %v298_v11 = vld [vmem:[%s2995_s11 + $0x4] sm:$0x1]  ;;  %v297_v12 = vld [vmem:[%s2995_s11] ss:$40 sps:$4 sm:$0xff]  }
  0x16   : > { %2550 = vmatprep.subr.bf16.mxu0 %v2761_v21  ;;  %2454 = vmatprep.subr.bf16.mxu1 %v2764_v22  ;;  %v3032_v47 = vadd.f32 %v3027_v45, %v362_v44  ;;  %v349_v60 = vmul.f32 %v3016_v41, %v322_v54  ;;  %v347_v61 = vmul.f32 %v3016_v41, %v320_v55  ;;  %v323_v1 = vunpack.c.l.bf16 %v303_v59  ;;  %v309_v44 = vld [vmem:[%s2995_s11 + $0x30] ss:$8 sps:$4 sm:$0xff]  }
  0x17   : > { %438 = vperm.xlu1 %2753, %v412_v15   ;;  %433 = vperm.xlu0 %2752, %v411_v16   ;;  %v3036_v48 = vadd.f32 %v3027_v45, %v363_v46  ;;  %v375_v62 = vadd.f32 %v3027_v45, %v348_v56  ;;  %v373_v63 = vadd.f32 %v3027_v45, %v346_v57  ;;  %v325_v3 = vunpack.c.h.bf16 %v303_v59  ;;  %v308_v15 = vld [vmem:[%s2995_s11 + $0x2c] sm:$0x1] }
  0x18   : > { %v376_v4 = vadd.f32 %v3027_v45, %v349_v60  ;;  %v374_v5 = vadd.f32 %v3027_v45, %v347_v61  ;;  %v326_v6 = vunpack.c.l.bf16 %v306_v2  ;;  %v351_v9 = vmul.f32 %v3016_v41, %v324_v0  ;;  %v312_v2 = vld [vmem:[%s2995_s11 + $0x3c] sm:$0x1] }
  0x19   : > { %2551 = vmatpush3.bf16.msra.mxu0 %v2761_v21  ;;  %2455 = vmatpush3.bf16.msra.mxu1 %v2764_v22  ;;  %v395_v7 = vmax.f32 %v375_v62, 0.0  ;;  %v393_v8 = vmax.f32 %v373_v63, 0.0  ;;  %v350_v10 = vmul.f32 %v3016_v41, %v323_v1  ;;  %v352_v13 = vmul.f32 %v3016_v41, %v325_v3 }
  0x1a   : > { %2552 = vmatprep.subr.bf16.mxu0 %v2763_v25  ;;  %2456 = vmatprep.subr.bf16.mxu1 %v2766_v26  ;;  %v396_v14 = vmax.f32 %v376_v4, 0.0  ;;  %v394_v18 = vmax.f32 %v374_v5, 0.0  ;;  %v317_v21 = vunpack.c.l.bf16 %v297_v12  ;;  %v329_v61 = vunpack.c.l.bf16 %v309_v44 }
  0x1b   : > { %488 = vperm.xlu1 %2753, %v422_v19   ;;  %483 = vperm.xlu0 %2752, %v421_v20   ;;  %v353_v19 = vmul.f32 %v3016_v41, %v326_v6  ;;  %v318_v20 = vunpack.c.l.bf16 %v298_v11  ;;  %v331_v6 = vunpack.c.h.bf16 %v309_v44 }
  0x1d   : > { %2553 = vmatpush3.bf16.msra.mxu0 %v2763_v25  ;;  %2457 = vmatpush3.bf16.msra.mxu1 %v2766_v26  ;;  %v377_v25 = vadd.f32 %v3027_v45, %v350_v10  ;;  %v379_v26 = vadd.f32 %v3027_v45, %v352_v13  ;;  %v332_v13 = vunpack.c.l.bf16 %v312_v2 }
  0x1e   : > { %2554 = vmatprep.subr.bf16.mxu0 %v2765_v29  ;;  %2458 = vmatprep.subr.bf16.mxu1 %v2768_v30 }
  0x1f   : > { %498 = vperm.xlu1 %2753, %v424_v23   ;;  %493 = vperm.xlu0 %2752, %v423_v24   ;;  %v378_v24 = vadd.f32 %v3027_v45, %v351_v9  ;;  %v397_v43 = vmax.f32 %v377_v25, 0.0  ;;  %v399_v46 = vmax.f32 %v379_v26, 0.0 }
  0x21   : > { %2555 = vmatpush3.bf16.msra.mxu0 %v2765_v29  ;;  %2459 = vmatpush3.bf16.msra.mxu1 %v2768_v30  ;;  %v310_v29 = vld [vmem:[%s2995_s11 + $0x34] sm:$0x1]  ;;  %v398_v40 = vmax.f32 %v378_v24, 0.0 }
  0x22   : > { %2556 = vmatprep.subr.bf16.mxu0 %v2767_v33  ;;  %2460 = vmatprep.subr.bf16.mxu1 %v2770_v35  ;;  %v330_v51 = vunpack.c.l.bf16 %v310_v29 }
  0x23   : > { %508 = vperm.xlu1 %2753, %v426_v27   ;;  %503 = vperm.xlu0 %2752, %v425_v28   ;;  %v328_v27 = vunpack.c.l.bf16 %v308_v15  ;;  %v327_v28 = vunpack.c.h.bf16 %v297_v12  ;;  %v356_v12 = vmul.f32 %v3016_v41, %v329_v61 }
  0x25   : > { %2557 = vmatpush3.bf16.msra.mxu0 %v2767_v33  ;;  %2461 = vmatpush3.bf16.msra.mxu1 %v2770_v35  ;;  %v345_v33 = vmul.f32 %v3016_v41, %v318_v20  ;;  %v355_v49 = vmul.f32 %v3016_v41, %v328_v27  ;;  %v354_v50 = vmul.f32 %v3016_v41, %v327_v28 }
  0x26   : > { %2566 = vmatprep.subr.bf16.mxu0 %v3009_v38  ;;  %2470 = vmatprep.subr.bf16.mxu1 %v3021_v42 }
  0x27   : > { %518 = vperm.xlu1 %2753, %v428_v31   ;;  %513 = vperm.xlu0 %2752, %v427_v32   ;;  %v380_v32 = vadd.f32 %v3027_v45, %v353_v19  ;;  %v372_v59 = vadd.f32 %v3027_v45, %v345_v33  ;;  %v382_v4 = vadd.f32 %v3027_v45, %v355_v49  ;;  %v333_v33 = vunpack.c.l.bf16 %v3004_v37  ;;  %v2771_v49 = vld [vmem:[%s3464_s1 + $0x148] sm:$0xff]  }
  0x28   : > { %v381_v5 = vadd.f32 %v3027_v45, %v354_v50 }
  0x29   : > { %v400_v58 = vmax.f32 %v380_v32, 0.0  ;;  %v392_v10 = vmax.f32 %v372_v59, 0.0  ;;  %v402_v19 = vmax.f32 %v382_v4, 0.0  ;;  %v359_v32 = vmul.f32 %v3016_v41, %v332_v13 }
  0x2a   : > { %v401_v20 = vmax.f32 %v381_v5, 0.0 }
  0x2b   : > { %528 = vperm.xlu1 %2753, %v430_v34   ;;  %523 = vperm.xlu0 %2752, %v429_v36   ;;  %v344_v34 = vmul.f32 %v3016_v41, %v317_v21  ;;  %v358_v21 = vmul.f32 %v3016_v41, %v331_v6  ;;  %v386_v61 = vadd.f32 %v3027_v45, %v359_v32 }
  0x2d   : > { %v371_v60 = vadd.f32 %v3027_v45, %v344_v34 }
  0x2f   : > { %v391_v11 = vmax.f32 %v371_v60, 0.0 }
  0x86   : > { %v454_v16 = vpop.permute.xlu1 %453  ;;  %v444_v17 = vpop.permute.xlu0 %443 }
  0x87   : > { %v3059_v22 = vmul.f32 %v454_v16, %v395_v7  ;;  %v3061_v23 = vmul.f32 %v444_v17, %v393_v8  ;;  %v357_v7 = vmul.f32 %v3016_v41, %v330_v51 }
  0x89   : > { %v1042_v35 = vpack.c.bf16 %v3059_v22, %v3061_v23  ;;  %v591_v54 = vrot.slane %v3061_v23, 1  ;;  %v594_v55 = vrot.slane %v3059_v22, 1  ;;  %v384_v26 = vadd.f32 %v3027_v45, %v357_v7 }
  0x8a   : > { %v459_v30 = vpop.permute.xlu1 %458  ;;  %v449_v31 = vpop.permute.xlu0 %448 }
  0x8b   : > { %v3072_v36 = vmul.f32 %v459_v30, %v396_v14  ;;  %v3074_v39 = vmul.f32 %v449_v31, %v394_v18  ;;  %v314_v14 = vld [vmem:[%s2995_s11 + $0x44] sm:$0x1]  ;;  %v383_v31 = vadd.f32 %v3027_v45, %v356_v12 }
  0x8c   : > { %v334_v27 = vunpack.c.l.bf16 %v314_v14  ;;  %v2775_v14 = vld [vmem:[%s3464_s1 + $0x158] sm:$0xff]  }
  0x8d   : > { %v595_v52 = vrot.slane %v3072_v36, 1  ;;  %v592_v53 = vrot.slane %v3074_v39, 1  ;;  %v875_v32 = vrot.slane %v3072_v36, 2  ;;  %v874_v36 = vrot.slane %v3059_v22, 2 }
  0x8e   : > { %v469_v56 = vpop.permute.xlu1 %468  ;;  %v464_v57 = vpop.permute.xlu0 %463 }
  0x8f   : > { %v3085_v62 = vmul.f32 %v469_v56, %v398_v40  ;;  %v3087_v63 = vmul.f32 %v464_v57, %v397_v43  ;;  %v3090_v0 = vsel %vm587_vm0, %v591_v54, %v592_v53  ;;  %v596_v1 = vsel %vm587_vm0, %v594_v55, %v595_v52 }
  0x90   : > { %v1190_v3 = vpack.c.bf16 %v596_v1, %v3090_v0  ;;  %v385_v52 = vadd.f32 %v3027_v45, %v358_v21  ;;  %v404_v54 = vmax.f32 %v384_v26, 0.0  ;;  %v403_v55 = vmax.f32 %v383_v31, 0.0  ;;  %v2777_v31 = vld [vmem:[%s3464_s1 + $0x160] sm:$0xff]  }
  0x91   : > { %v598_v15 = vrot.slane %v3085_v62, 1  ;;  %v597_v18 = vrot.slane %v3087_v63, 1  ;;  %v361_v56 = vmul.f32 %v3016_v41, %v334_v27  ;;  %v360_v57 = vmul.f32 %v3016_v41, %v333_v33 }
  0x92   : > { %v479_v8 = vpop.permute.xlu1 %478  ;;  %v474_v9 = vpop.permute.xlu0 %473  ;;  %2558 = vmatprep.mubr.bf16.mxu0 %v1190_v3  ;;  %v2773_v3 = vld [vmem:[%s3464_s1 + $0x150] sm:$0xff]  }
  0x93   : > { %v3101_v16 = vmul.f32 %v479_v8, %v400_v58  ;;  %v3103_v17 = vmul.f32 %v474_v9, %v399_v46  ;;  %v599_v34 = vsel %vm587_vm0, %v597_v18, %v598_v15  ;;  %v405_v8 = vmax.f32 %v385_v52, 0.0  ;;  %v2776_v18 = vld [vmem:[%s3464_s1 + $0x10] sm:$0xff]  }
  0x94   : > { %v3140_v4 = vpack.c.bf16 %v599_v34, %v596_v1  ;;  %v387_v9 = vadd.f32 %v3027_v45, %v360_v57 }
  0x95   : > { %v601_v24 = vrot.slane %v3101_v16, 1  ;;  %v600_v25 = vrot.slane %v3103_v17, 1  ;;  %v1043_v28 = vpack.c.bf16 %v3103_v17, %v3087_v63 }
  0x96   : > { %v439_v29 = vpop.permute.xlu1 %438  ;;  %v434_v30 = vpop.permute.xlu0 %433  ;;  %v407_v26 = vmax.f32 %v387_v9, 0.0 }
  0x97   : > { %v3116_v40 = vmul.f32 %v439_v29, %v392_v10  ;;  %v3118_v43 = vmul.f32 %v434_v30, %v391_v11  ;;  %v602_v44 = vsel %vm587_vm0, %v600_v25, %v601_v24  ;;  %v406_v11 = vmax.f32 %v386_v61, 0.0 }
  0x98   : > { %v1191_v46 = vpack.c.bf16 %v602_v44, %v599_v34  ;;  %v872_v29 = vrot.slane %v3074_v39, 2  ;;  %v871_v39 = vrot.slane %v3061_v23, 2  ;;  %v3206_v61 = vsel %vm867_vm1, %v874_v36, %v875_v32  ;;  %v2784_v32 = vld [vmem:[%s3464_s1 + $0x30] sm:$0xff]  }
  0x99   : > { %v589_v50 = vrot.slane %v3116_v40, 1  ;;  %v588_v51 = vrot.slane %v3118_v43, 1  ;;  %v551_v57 = vpack.c.bf16 %v3061_v23, %v3118_v43  ;;  %v2815_v23 = vld [vmem:[%s3464_s1 + $0x1f8] sm:$0xff]  }
  0x9a   : > { %v489_v37 = vpop.permute.xlu1 %488  ;;  %v484_v53 = vpop.permute.xlu0 %483  ;;  %2559 = vmatmul.mubr.bf16.vlgmr.msra.gmra.mrb[0].mxu0 %v1191_v46 }
  0x9b   : > { %v3129_v58 = vmul.f32 %v489_v37, %v402_v19  ;;  %v3131_v59 = vmul.f32 %v484_v53, %v401_v20  ;;  %2567 = vmatpush3.bf16.msra.mxu0 %v3009_v38  ;;  %v590_v60 = vsel %vm587_vm0, %v588_v51, %v589_v50  ;;  %v2774_v38 = vld [vmem:[%s3464_s1 + $0x8] sm:$0xff]   ;;  %v410_v50 = vmax.f32 %v3036_v48, 0.0 }
  0x9c   : > { %2568 = vmatprep.subr.bf16.mxu0 %v2771_v49  ;;  %v620_v2 = vpack.c.bf16 %v3090_v0, %v590_v60  ;;  %v388_v0 = vadd.f32 %v3027_v45, %v361_v56  ;;  %v409_v51 = vmax.f32 %v3032_v47, 0.0  ;;  %v3197_v48 = vsel %vm867_vm1, %v871_v39, %v872_v29  ;;  %v2780_v60 = vld [vmem:[%s3464_s1 + $0x20] sm:$0xff]  }
  0x9d   : > { %v604_v41 = vrot.slane %v3129_v58, 1  ;;  %v603_v5 = vrot.slane %v3131_v59, 1  ;;  %v1336_v9 = vpack.c.bf16 %v3206_v61, %v3197_v48  ;;  %v877_v39 = vrot.slane %v3087_v63, 2 }
  0x9e   : > { %v499_v6 = vpop.permute.xlu1 %498  ;;  %v494_v7 = vpop.permute.xlu0 %493  ;;  %2462 = vmatprep.mubr.bf16.mxu1 %v620_v2 }
  0x9f   : > { %v3149_v10 = vmul.f32 %v499_v6, %v404_v54  ;;  %v3151_v1 = vmul.f32 %v494_v7, %v403_v55  ;;  %2569 = vmatpush3.bf16.msra.mxu0 %v2771_v49  ;;  %2463 = vmatmul.mubr.bf16.vlgmr.msra.gmra.mrb[0].mxu1 %v3140_v4  ;;  %v605_v12 = vsel %vm587_vm0, %v603_v5, %v604_v41  ;;  %v2779_v55 = vld [vmem:[%s3464_s1 + $0x168] sm:$0xff]  }
  0xa0   : > { %2471 = vmatpush3.bf16.msra.mxu1 %v3021_v42  ;;  %2570 = vmatprep.subr.bf16.mxu0 %v2773_v3  ;;  %v3156_v13 = vpack.c.bf16 %v605_v12, %v602_v44  ;;  %v408_v42 = vmax.f32 %v388_v0, 0.0  ;;  %v2778_v44 = vld [vmem:[%s3464_s1 + $0x18] sm:$0xff]  }
  0xa1   : > { %v607_v45 = vrot.slane %v3149_v10, 1  ;;  %v606_v15 = vrot.slane %v3151_v1, 1  ;;  %2472 = vmatprep.subr.bf16.mxu1 %v2774_v38  ;;  %v1044_v21 = vpack.c.bf16 %v3151_v1, %v3131_v59 }
  0xa2   : > { %v509_v19 = vpop.permute.xlu1 %508  ;;  %v504_v20 = vpop.permute.xlu0 %503  ;;  %2466 = vmatprep.mubr.bf16.mxu1 %v3156_v13 }
  0xa3   : > { %v3169_v24 = vmul.f32 %v509_v19, %v406_v11  ;;  %v3171_v25 = vmul.f32 %v504_v20, %v405_v8  ;;  %2571 = vmatpush3.bf16.msra.mxu0 %v2773_v3  ;;  %v608_v27 = vsel %vm587_vm0, %v606_v15, %v607_v45  ;;  %v2781_v11 = vld [vmem:[%s3464_s1 + $0x170] sm:$0xff]  }
  0xa4   : > { %2473 = vmatpush3.bf16.msra.mxu1 %v2774_v38  ;;  %2572 = vmatprep.subr.bf16.mxu0 %v2775_v14  ;;  %v1192_v30 = vpack.c.bf16 %v608_v27, %v605_v12 }
  0xa5   : > { %v610_v33 = vrot.slane %v3169_v24, 1  ;;  %v609_v34 = vrot.slane %v3171_v25, 1  ;;  %2474 = vmatprep.subr.bf16.mxu1 %v2776_v18 }
  0xa6   : > { %v519_v46 = vpop.permute.xlu1 %518  ;;  %v514_v49 = vpop.permute.xlu0 %513  ;;  %2562 = vmatprep.mubr.bf16.mxu0 %v1192_v30  ;;  %v881_v30 = vrot.slane %v3101_v16, 2  ;;  %v883_v16 = vrot.slane %v3131_v59, 2 }
  0xa7   : > { %v548_v52 = vmul.f32 %v519_v46, %v408_v42  ;;  %v3188_v37 = vmul.f32 %v514_v49, %v407_v26  ;;  %2573 = vmatpush3.bf16.msra.mxu0 %v2775_v14  ;;  %v611_v53 = vsel %vm587_vm0, %v609_v34, %v610_v33  ;;  %v2783_v26 = vld [vmem:[%s3464_s1 + $0x178] sm:$0xff]   ;;  %v887_v33 = vrot.slane %v3149_v10, 2  ;;  %v2785_v49 = vld [vmem:[%s3464_s1 + $0x180] sm:$0xff]  }
  0xa8   : > { %2475 = vmatpush3.bf16.msra.mxu1 %v2776_v18  ;;  %2574 = vmatprep.subr.bf16.mxu0 %v2777_v31  ;;  %v3191_v54 = vpack.c.bf16 %v611_v53, %v608_v27  ;;  %v2782_v18 = vld [vmem:[%s3464_s1 + $0x28] sm:$0xff]   ;;  %v886_v34 = vrot.slane %v3151_v1, 2  ;;  %v884_v46 = vrot.slane %v3129_v58, 2 }
  0xa9   : > { %v1187_v47 = vrot.slane %v548_v52, 1  ;;  %v1186_v56 = vrot.slane %v3188_v37, 1  ;;  %2476 = vmatprep.subr.bf16.mxu1 %v2778_v44  ;;  %v1333_v2 = vrot.slane %v548_v52, 2  ;;  %v1045_v5 = vpack.c.bf16 %v3188_v37, %v3171_v25  ;;  %v2787_v52 = vld [vmem:[%s3464_s1 + $0x188] sm:$0xff]  }
  0xaa   : > { %v529_v3 = vpop.permute.xlu1 %528  ;;  %v524_v41 = vpop.permute.xlu0 %523  ;;  %2467 = vmatmul.mubr.bf16.gmra.mrb[4].mxu1 %v3191_v54  ;;  %v1332_v38 = vrot.slane %v3188_v37, 2  ;;  %v3265_v10 = vsel %vm867_vm1, %v886_v34, %v887_v33  ;;  %v3273_v36 = vsel %vm867_vm1, %v883_v16, %v884_v46  ;;  %v2803_v33 = vld [vmem:[%s3464_s1 + $0x1c8] sm:$0xff]   ;;  %v2804_v34 = vld [vmem:[%s3464_s1 + $0xc0] sm:$0xff]  }
  0xab   : > { %v550_v6 = vmul.f32 %v529_v3, %v410_v50  ;;  %v3212_v7 = vmul.f32 %v524_v41, %v409_v51  ;;  %2575 = vmatpush3.bf16.msra.mxu0 %v2777_v31  ;;  %2486 = vmatprep.mubr.bf16.mxu1 %v551_v57  ;;  %v3215_v8 = vsel %vm587_vm0, %v1186_v56, %v1187_v47  ;;  %v880_v31 = vrot.slane %v3103_v17, 2  ;;  %v2806_v46 = vld [vmem:[%s3464_s1 + $0xc8] sm:$0xff]  }
  0xac   : > { %2477 = vmatpush3.bf16.msra.mxu1 %v2778_v44  ;;  %2576 = vmatprep.subr.bf16.mxu0 %v2779_v55  ;;  %v1193_v0 = vpack.c.bf16 %v3215_v8, %v611_v53  ;;  %v3229_v19 = vsel %vm867_vm1, %v1332_v38, %v1333_v2  ;;  %v878_v44 = vrot.slane %v3085_v62, 2  ;;  %v2786_v62 = vld [vmem:[%s3464_s1 + $0x38] sm:$0xff]   ;;  %v1338_v53 = vpack.c.bf16 %v3265_v10, %v3273_v36  ;;  %v2790_v2 = vld [vmem:[%s3464_s1 + $0x88] sm:$0xff]  }
  0xad   : > { %v1620_v12 = vrot.slane %v550_v6, 1  ;;  %v1763_v14 = vrot.slane %v550_v6, 2  ;;  %v1619_v45 = vrot.slane %v3212_v7, 1  ;;  %v1762_v15 = vrot.slane %v3212_v7, 2  ;;  %2478 = vmatprep.subr.bf16.mxu1 %v2780_v60 }
  0xae   : > { %2563 = vmatmul.mubr.bf16.gmra.mrb[4].mxu0 %v1193_v0  ;;  %v3259_v50 = vsel %vm867_vm1, %v880_v31, %v881_v30  ;;  %v3268_v58 = vsel %vm867_vm1, %v877_v39, %v878_v44  ;;  %v890_v47 = vrot.slane %v3169_v24, 2  ;;  %v889_v56 = vrot.slane %v3171_v25, 2  ;;  %v2791_v0 = vld [vmem:[%s3464_s1 + $0x198] sm:$0xff]   ;;  %v2800_v30 = vld [vmem:[%s3464_s1 + $0xb0] sm:$0xff]   ;;  %v2801_v31 = vld [vmem:[%s3464_s1 + $0x1c0] sm:$0xff]  }
  0xaf   : > { %2577 = vmatpush3.bf16.msra.mxu0 %v2779_v55  ;;  %2582 = vmatprep.mubr.bf16.mxu0 %v1336_v9  ;;  %v3232_v20 = vsel %vm867_vm1, %v1762_v15, %v1763_v14  ;;  %v3235_v42 = vsel %vm587_vm0, %v1619_v45, %v1620_v12  ;;  %v1337_v51 = vpack.c.bf16 %v3259_v50, %v3268_v58  ;;  %v2788_v55 = vld [vmem:[%s3464_s1 + $0x80] sm:$0xff]   ;;  %v869_v3 = vrot.slane %v3116_v40, 2  ;;  %v2792_v40 = vld [vmem:[%s3464_s1 + $0x90] sm:$0xff]   ;;  %v2794_v12 = vld [vmem:[%s3464_s1 + $0x98] sm:$0xff]  }
  0xb0   : > { %2479 = vmatpush3.bf16.msra.mxu1 %v2780_v60  ;;  %2578 = vmatprep.subr.bf16.mxu0 %v2781_v11  ;;  %v1766_v27 = vpack.c.bf16 %v3232_v20, %v3229_v19  ;;  %v1623_v29 = vpack.c.bf16 %v3235_v42, %v3215_v8  ;;  %v552_v57 = vpack.c.bf16 %v3087_v63, %v3059_v22  ;;  %v2789_v60 = vld [vmem:[%s3464_s1 + $0x190] sm:$0xff]   ;;  %v868_v41 = vrot.slane %v3118_v43, 2  ;;  %v2795_v45 = vld [vmem:[%s3464_s1 + $0x1a8] sm:$0xff]   ;;  %v2796_v15 = vld [vmem:[%s3464_s1 + $0xa0] sm:$0xff]  }
  0xb1   : > { %2480 = vmatprep.subr.bf16.mxu1 %v2782_v18  ;;  %v553_v24 = vpack.c.bf16 %v3131_v59, %v3103_v17  ;;  %v3298_v38 = vsel %vm867_vm1, %v889_v56, %v890_v47  ;;  %v554_v9 = vpack.c.bf16 %v3171_v25, %v3151_v1  ;;  %v3350_v44 = vpack.c.bf16 %v3268_v58, %v3206_v61  ;;  %v2805_v39 = vld [vmem:[%s3464_s1 + $0x1d0] sm:$0xff]   ;;  %v2810_v58 = vld [vmem:[%s3464_s1 + $0xd8] sm:$0xff]   ;;  %v2814_v22 = vld [vmem:[%s3464_s1 + $0xe8] sm:$0xff]  }
  0xb2   : > { %v1339_v6 = vpack.c.bf16 %v3229_v19, %v3298_v38  ;;  %v870_v43 = vsel %vm867_vm1, %v868_v41, %v869_v3  ;;  %v3360_v16 = vpack.c.bf16 %v3273_v36, %v3259_v50  ;;  %v1478_v61 = vpack.c.bf16 %v3212_v7, %v3188_v37  ;;  %v2808_v50 = vld [vmem:[%s3464_s1 + $0xd0] sm:$0xff]   ;;  %v2809_v7 = vld [vmem:[%s3464_s1 + $0x1e0] sm:$0xff]   ;;  %v2823_v17 = vld [vmem:[%s3464_s1 + $0x228] sm:$0xff]  }
  0xb3   : > { %2579 = vmatpush3.bf16.msra.mxu0 %v2781_v11  ;;  %v2793_v11 = vld [vmem:[%s3464_s1 + $0x1a0] sm:$0xff]   ;;  %v900_v14 = vpack.c.bf16 %v3197_v48, %v870_v43  ;;  %v2797_v48 = vld [vmem:[%s3464_s1 + $0x1b0] sm:$0xff]   ;;  %v2825_v59 = vld [vmem:[%s3464_s1 + $0x238] sm:$0xff]  }
  0xb4   : > { %2481 = vmatpush3.bf16.msra.mxu1 %v2782_v18  ;;  %2580 = vmatprep.subr.bf16.mxu0 %v2783_v26  ;;  %v2798_v18 = vld [vmem:[%s3464_s1 + $0xa8] sm:$0xff]   ;;  %v2817_v36 = vld [vmem:[%s3464_s1 + $0x200] sm:$0xff]  }
  0xb5   : > { %2482 = vmatprep.subr.bf16.mxu1 %v2784_v32  ;;  %v2822_v63 = vld [vmem:[%s3464_s1 + $0x220] sm:$0xff]  }
  0xb7   : > { %2581 = vmatpush3.bf16.msra.mxu0 %v2783_v26  ;;  %v2799_v26 = vld [vmem:[%s3464_s1 + $0x1b8] sm:$0xff]  }
  0xb8   : > { %2483 = vmatpush3.bf16.msra.mxu1 %v2784_v32  ;;  %2590 = vmatprep.subr.bf16.mxu0 %v2785_v49  ;;  %v2802_v32 = vld [vmem:[%s3464_s1 + $0xb8] sm:$0xff]  }
  0xb9   : > { %2484 = vmatprep.subr.bf16.mxu1 %v2786_v62 }
  0xba   : > { %2583 = vmatmul.mubr.bf16.vlgmr.msra.gmra.mrb[0].mxu0 %v1337_v51  ;;  %v2813_v51 = vld [vmem:[%s3464_s1 + $0x1f0] sm:$0xff]  }
  0xbb   : > { %2586 = vmatprep.mubr.bf16.mxu0 %v1338_v53  ;;  %2591 = vmatpush3.bf16.msra.mxu0 %v2785_v49  ;;  %v2807_v49 = vld [vmem:[%s3464_s1 + $0x1d8] sm:$0xff]   ;;  %v2819_v53 = vld [vmem:[%s3464_s1 + $0x208] sm:$0xff]  }
  0xbc   : > { %2485 = vmatpush3.bf16.msra.mxu1 %v2786_v62  ;;  %2592 = vmatprep.subr.bf16.mxu0 %v2787_v52  ;;  %v903_v62 = vpack.c.bf16 %v3298_v38, %v3265_v10  ;;  %v2812_v10 = vld [vmem:[%s3464_s1 + $0xe0] sm:$0xff]  }
  0xbd   : > { %2494 = vmatprep.subr.bf16.mxu1 %v2788_v55 }
  0xbf   : > { %2487 = vmatmul.mubr.bf16.vlgmr.msra.gmra.mrb[0].mxu1 %v552_v57  ;;  %2593 = vmatpush3.bf16.msra.mxu0 %v2787_v52  ;;  %v2818_v52 = vld [vmem:[%s3464_s1 + $0xf8] sm:$0xff]  }
  0xc0   : > { %2490 = vmatprep.mubr.bf16.mxu1 %v553_v24  ;;  %2495 = vmatpush3.bf16.msra.mxu1 %v2788_v55  ;;  %v2820_v55 = vld [vmem:[%s3464_s1 + $0x210] sm:$0xff]  }
  0xc1   : > { %2594 = vmatprep.subr.bf16.mxu0 %v2789_v60  ;;  %2496 = vmatprep.subr.bf16.mxu1 %v2790_v2 }
  0xc2   : > { %2587 = vmatmul.mubr.bf16.gmra.mrb[4].mxu0 %v1339_v6 }
  0xc3   : > { %2595 = vmatpush3.bf16.msra.mxu0 %v2789_v60  ;;  %2606 = vmatprep.mubr.bf16.mxu0 %v552_v57 }
  0xc4   : > { %2497 = vmatpush3.bf16.msra.mxu1 %v2790_v2  ;;  %2596 = vmatprep.subr.bf16.mxu0 %v2791_v0 }
  0xc5   : > { %2498 = vmatprep.subr.bf16.mxu1 %v2792_v40 }
  0xc7   : > { %2491 = vmatmul.mubr.bf16.gmra.mrb[4].mxu1 %v554_v9  ;;  %2597 = vmatpush3.bf16.msra.mxu0 %v2791_v0 }
  0xc8   : > { %2499 = vmatpush3.bf16.msra.mxu1 %v2792_v40  ;;  %2510 = vmatprep.mubr.bf16.mxu1 %v900_v14 }
  0xc9   : > { %2598 = vmatprep.subr.bf16.mxu0 %v2793_v11  ;;  %2500 = vmatprep.subr.bf16.mxu1 %v2794_v12 }
  0xcb   : > { %2599 = vmatpush3.bf16.msra.mxu0 %v2793_v11 }
  0xcc   : > { %2501 = vmatpush3.bf16.msra.mxu1 %v2794_v12  ;;  %2600 = vmatprep.subr.bf16.mxu0 %v2795_v45 }
  0xcd   : > { %2502 = vmatprep.subr.bf16.mxu1 %v2796_v15 }
  0xcf   : > { %2601 = vmatpush3.bf16.msra.mxu0 %v2795_v45 }
  0xd0   : > { %2503 = vmatpush3.bf16.msra.mxu1 %v2796_v15  ;;  %2602 = vmatprep.subr.bf16.mxu0 %v2797_v48 }
  0xd1   : > { %2504 = vmatprep.subr.bf16.mxu1 %v2798_v18 }
  0xd3   : > { %2603 = vmatpush3.bf16.msra.mxu0 %v2797_v48 }
  0xd4   : > { %2505 = vmatpush3.bf16.msra.mxu1 %v2798_v18  ;;  %2604 = vmatprep.subr.bf16.mxu0 %v2799_v26 }
  0xd5   : > { %2506 = vmatprep.subr.bf16.mxu1 %v2800_v30 }
  0xd7   : > { %2605 = vmatpush3.bf16.msra.mxu0 %v2799_v26 }
  0xd8   : > { %2507 = vmatpush3.bf16.msra.mxu1 %v2800_v30  ;;  %2614 = vmatprep.subr.bf16.mxu0 %v2801_v31 }
  0xd9   : > { %2508 = vmatprep.subr.bf16.mxu1 %v2802_v32 }
  0xda   : > { %2607 = vmatmul.mubr.bf16.vlgmr.msra.gmra.mrb[0].mxu0 %v553_v24 }
  0xdb   : > { %2610 = vmatprep.mubr.bf16.mxu0 %v554_v9  ;;  %2615 = vmatpush3.bf16.msra.mxu0 %v2801_v31 }
  0xdc   : > { %2509 = vmatpush3.bf16.msra.mxu1 %v2802_v32  ;;  %2616 = vmatprep.subr.bf16.mxu0 %v2803_v33 }
  0xdd   : > { %2518 = vmatprep.subr.bf16.mxu1 %v2804_v34 }
  0xdf   : > { %2511 = vmatmul.mubr.bf16.vlgmr.msra.gmra.mrb[0].mxu1 %v3350_v44  ;;  %2617 = vmatpush3.bf16.msra.mxu0 %v2803_v33 }
  0xe0   : > { %2514 = vmatprep.mubr.bf16.mxu1 %v3360_v16  ;;  %2519 = vmatpush3.bf16.msra.mxu1 %v2804_v34 }
  0xe1   : > { %2618 = vmatprep.subr.bf16.mxu0 %v2805_v39  ;;  %2520 = vmatprep.subr.bf16.mxu1 %v2806_v46 }
  0xe2   : > { %2611 = vmatmul.mubr.bf16.gmra.mrb[4].mxu0 %v1478_v61 }
  0xe3   : > { %2619 = vmatpush3.bf16.msra.mxu0 %v2805_v39  ;;  %2630 = vmatprep.mubr.bf16.mxu0 %v3140_v4  ;;  %v2811_v4 = vld [vmem:[%s3464_s1 + $0x1e8] sm:$0xff]  }
  0xe4   : > { %2521 = vmatpush3.bf16.msra.mxu1 %v2806_v46  ;;  %2620 = vmatprep.subr.bf16.mxu0 %v2807_v49 }
  0xe5   : > { %2522 = vmatprep.subr.bf16.mxu1 %v2808_v50 }
  0xe7   : > { %2515 = vmatmul.mubr.bf16.gmra.mrb[4].mxu1 %v903_v62  ;;  %2621 = vmatpush3.bf16.msra.mxu0 %v2807_v49 }
  0xe8   : > { %2523 = vmatpush3.bf16.msra.mxu1 %v2808_v50  ;;  %2534 = vmatprep.mubr.bf16.mxu1 %v1042_v35  ;;  %v2816_v35 = vld [vmem:[%s3464_s1 + $0xf0] sm:$0xff]  }
  0xe9   : > { %2622 = vmatprep.subr.bf16.mxu0 %v2809_v7  ;;  %2524 = vmatprep.subr.bf16.mxu1 %v2810_v58 }
  0xeb   : > { %2623 = vmatpush3.bf16.msra.mxu0 %v2809_v7 }
  0xec   : > { %2525 = vmatpush3.bf16.msra.mxu1 %v2810_v58  ;;  %2624 = vmatprep.subr.bf16.mxu0 %v2811_v4 }
  0xed   : > { %2526 = vmatprep.subr.bf16.mxu1 %v2812_v10 }
  0xef   : > { %2625 = vmatpush3.bf16.msra.mxu0 %v2811_v4 }
  0xf0   : > { %2527 = vmatpush3.bf16.msra.mxu1 %v2812_v10  ;;  %2626 = vmatprep.subr.bf16.mxu0 %v2813_v51 }
  0xf1   : > { %2528 = vmatprep.subr.bf16.mxu1 %v2814_v22 }
  0xf3   : > { %2627 = vmatpush3.bf16.msra.mxu0 %v2813_v51 }
  0xf4   : > { %2529 = vmatpush3.bf16.msra.mxu1 %v2814_v22  ;;  %2628 = vmatprep.subr.bf16.mxu0 %v2815_v23 }
  0xf5   : > { %2530 = vmatprep.subr.bf16.mxu1 %v2816_v35 }
  0xf7   : > { %2629 = vmatpush3.bf16.msra.mxu0 %v2815_v23 }
  0xf8   : > { %2531 = vmatpush3.bf16.msra.mxu1 %v2816_v35  ;;  %2638 = vmatprep.subr.bf16.mxu0 %v2817_v36 }
  0xf9   : > { %2532 = vmatprep.subr.bf16.mxu1 %v2818_v52 }
  0xfa   : > { %2631 = vmatmul.mubr.bf16.vlgmr.msra.gmra.mrb[0].mxu0 %v3156_v13  ;;  %v2821_v13 = vld [vmem:[%s3464_s1 + $0x218] sm:$0xff]  }
  0xfb   : > { %2634 = vmatprep.mubr.bf16.mxu0 %v3191_v54  ;;  %2639 = vmatpush3.bf16.msra.mxu0 %v2817_v36 }
  0xfc   : > { %2533 = vmatpush3.bf16.msra.mxu1 %v2818_v52  ;;  %2640 = vmatprep.subr.bf16.mxu0 %v2819_v53 }
  0xfd   : > { %2662 = vmatprep.subr.bf16.mxu1 %v2817_v36 }
  0xff   : > { %2535 = vmatmul.mubr.bf16.vlgmr.msra.gmra.mrb[0].mxu1 %v1043_v28  ;;  %2641 = vmatpush3.bf16.msra.mxu0 %v2819_v53  ;;  %v2824_v28 = vld [vmem:[%s3464_s1 + $0x230] sm:$0xff]  }
 0x100   : > { %2538 = vmatprep.mubr.bf16.mxu1 %v1044_v21  ;;  %2670 = vmatpush3.bf16.msra.mxu1 %v2817_v36 }
 0x101   : > { %2642 = vmatprep.subr.bf16.mxu0 %v2820_v55  ;;  %2663 = vmatprep.subr.bf16.mxu1 %v2819_v53 }
 0x102   : > { %2635 = vmatmul.mubr.bf16.gmra.mrb[4].mxu0 %v1623_v29 }
 0x103   : > { %2643 = vmatpush3.bf16.msra.mxu0 %v2820_v55  ;;  %2654 = vmatprep.mubr.bf16.mxu0 %v3350_v44 }
 0x104   : > { %2671 = vmatpush3.bf16.msra.mxu1 %v2819_v53  ;;  %2644 = vmatprep.subr.bf16.mxu0 %v2821_v13 }
 0x105   : > { %2664 = vmatprep.subr.bf16.mxu1 %v2820_v55 }
 0x107   : > { %2539 = vmatmul.mubr.bf16.gmra.mrb[4].mxu1 %v1045_v5  ;;  %2645 = vmatpush3.bf16.msra.mxu0 %v2821_v13 }
 0x108   : > { %2672 = vmatpush3.bf16.msra.mxu1 %v2820_v55  ;;  %2658 = vmatprep.mubr.bf16.mxu1 %v903_v62 }
 0x109   : > { %2646 = vmatprep.subr.bf16.mxu0 %v2822_v63  ;;  %2665 = vmatprep.subr.bf16.mxu1 %v2821_v13 }
 0x10b   : > { %2647 = vmatpush3.bf16.msra.mxu0 %v2822_v63 }
 0x10c   : > { %2673 = vmatpush3.bf16.msra.mxu1 %v2821_v13  ;;  %2648 = vmatprep.subr.bf16.mxu0 %v2823_v17 }
 0x10d   : > { %2666 = vmatprep.subr.bf16.mxu1 %v2822_v63 }
 0x10f   : > { %2649 = vmatpush3.bf16.msra.mxu0 %v2823_v17 }
 0x110   : > { %2674 = vmatpush3.bf16.msra.mxu1 %v2822_v63  ;;  %2650 = vmatprep.subr.bf16.mxu0 %v2824_v28 }
 0x111   : > { %2667 = vmatprep.subr.bf16.mxu1 %v2823_v17 }
 0x113   : > { %2651 = vmatpush3.bf16.msra.mxu0 %v2824_v28 }
 0x114   : > { %2675 = vmatpush3.bf16.msra.mxu1 %v2823_v17  ;;  %2652 = vmatprep.subr.bf16.mxu0 %v2825_v59 }
 0x115   : > { %2668 = vmatprep.subr.bf16.mxu1 %v2824_v28 }
 0x117   : > { %2653 = vmatpush3.bf16.msra.mxu0 %v2825_v59 }
 0x118   : > { %2676 = vmatpush3.bf16.msra.mxu1 %v2824_v28 }
 0x119   : > { %2669 = vmatprep.subr.bf16.mxu1 %v2825_v59 }
 0x11a   : > { %2655 = vmatmul.mubr.bf16.vlgmr.msra.gmra.mrb[0].mxu0 %v3360_v16 }
 0x11c   : > { %2677 = vmatpush3.bf16.msra.mxu1 %v2825_v59 }
 0x11f   : > { %2659 = vmatmul.mubr.bf16.vlgmr.msra.gmra.mrb[8].mxu1 %v1766_v27 }
 0x1d2   : > { %v2536_v1 = vpop.f32.mrb[0].mxu1 }
 0x1d3   : > { %v1145_v21 = vpop.f32.mrb[1].mxu1 }
 0x1d4   : > { %v2537_v25 = vpop.f32.mrb[2].mxu1 }
 0x1d5   : > { %v1148_v37 = vpop.f32.mrb[3].mxu1  ;;  %v2636_v54 = vpop.f32.mrb[4].mxu0 }
 0x1d6   : > { %v1739_v5 = vpop.f32.mrb[5].mxu0 }
 0x1d7   : > { %v2637_v8 = vpop.f32.mrb[6].mxu0 }
 0x1d8   : > { %v1742_v42 = vpop.f32.mrb[7].mxu0 }
 0x1da   : > { %v2540_v29 = vpop.f32.mrb[4].mxu1 }
 0x1db   : > { %v2682_v47 = vadd.f32 %v2636_v54, %v2540_v29  ;;  %v1161_v56 = vpop.f32.mrb[5].mxu1 }
 0x1dc   : > { %v2684_v57 = vadd.f32 %v1739_v5, %v1161_v56  ;;  %v2541_v60 = vpop.f32.mrb[6].mxu1 }
 0x1dd   : > { %v2686_v2 = vadd.f32 %v2637_v8, %v2541_v60  ;;  %v1164_v24 = vpop.f32.mrb[7].mxu1 }
 0x1de   : > { %v2688_v3 = vadd.f32 %v1742_v42, %v1164_v24 }
 0x1ed   : > { %v2656_v41 = vpop.f32.mrb[0].mxu0 }
 0x1ee   : > { %v2678_v19 = vadd.f32 %v2656_v41, %v2536_v1  ;;  %v1866_v20 = vpop.f32.mrb[1].mxu0 }
 0x1ef   : > { %v2679_v27 = vadd.f32 %v1866_v20, %v1145_v21  ;;  %v2657_v38 = vpop.f32.mrb[2].mxu0 }
 0x1f0   : > { %v2680_v6 = vadd.f32 %v2657_v38, %v2537_v25  ;;  %v1869_v0 = vpop.f32.mrb[3].mxu0  ;;  %v1961_v30 = vmul.f32 %v2678_v19, %v2678_v19 }
 0x1f1   : > { %v2681_v40 = vadd.f32 %v1869_v0, %v1148_v37  ;;  %v1959_v43 = vmul.f32 %v2679_v27, %v2679_v27 }
 0x1f2   : > { %v2323_v9 = vpack.c.bf16 %v2680_v6, %v2678_v19  ;;  %v2660_v11 = vpop.f32.mrb[8].mxu1  ;;  %v1962_v39 = vmul.f32 %v2680_v6, %v2680_v6 }
 0x1f3   : > { %v2318_v12 = vpack.c.bf16 %v2681_v40, %v2679_v27  ;;  %v1945_v14 = vadd.f32 %v2681_v40, %v2679_v27  ;;  %v1960_v45 = vmul.f32 %v2681_v40, %v2681_v40  ;;  %v2683_v15 = vadd.f32 %v2682_v47, %v2660_v11  ;;  %v1882_v48 = vpop.f32.mrb[9].mxu1 }
 0x1f4   : > { %2335 = vst [vmem:[%s289_s9 + $0x8] sm:$0xff] %v2323_v9   ;;  %v2685_v18 = vadd.f32 %v2684_v57, %v1882_v48  ;;  %v2661_v26 = vpop.f32.mrb[10].mxu1 }
 0x1f5   : > { %2319 = vst [vmem:[%s289_s9] sm:$0xff] %v2318_v12   ;;  %v1946_v31 = vadd.f32 %v2678_v19, %v1945_v14  ;;  %v1967_v32 = vadd.f32 %v1960_v45, %v1959_v43  ;;  %v2687_v33 = vadd.f32 %v2686_v2, %v2661_v26  ;;  %v1885_v34 = vpop.f32.mrb[11].mxu1  ;;  %v1965_v51 = vmul.f32 %v2683_v15, %v2683_v15 }
 0x1f6   : > { %v2689_v44 = vadd.f32 %v2688_v3, %v1885_v34  ;;  %v1963_v62 = vmul.f32 %v2685_v18, %v2685_v18 }
 0x1f7   : > { %v1968_v46 = vadd.f32 %v1967_v32, %v1961_v30  ;;  %v1947_v16 = vadd.f32 %v2680_v6, %v1946_v31  ;;  %v2333_v61 = vpack.c.bf16 %v2687_v33, %v2683_v15  ;;  %v1966_v35 = vmul.f32 %v2687_v33, %v2687_v33 }
 0x1f8   : > { %v2328_v49 = vpack.c.bf16 %v2689_v44, %v2685_v18  ;;  %v1964_v10 = vmul.f32 %v2689_v44, %v2689_v44 }
 0x1f9   : > { %v1948_v50 = vadd.f32 %v2685_v18, %v1947_v16  ;;  %v1969_v7 = vadd.f32 %v1968_v46, %v1962_v39  ;;  %2337 = vst [vmem:[%s289_s9 + $0x18] sm:$0xff] %v2333_v61  }
 0x1fa   : > { %2336 = vst [vmem:[%s289_s9 + $0x10] sm:$0xff] %v2328_v49  }
 0x1fb   : > { %v1970_v58 = vadd.f32 %v1969_v7, %v1963_v62  ;;  %v1949_v4 = vadd.f32 %v2689_v44, %v1948_v50 }
 0x1fd   : > { %v1950_v22 = vadd.f32 %v2683_v15, %v1949_v4  ;;  %v1971_v23 = vadd.f32 %v1970_v58, %v1964_v10 }
 0x1ff   : > { %v1951_v36 = vadd.f32 %v2687_v33, %v1950_v22  ;;  %v1972_v52 = vadd.f32 %v1971_v23, %v1965_v51 }
 0x201   : > { %v1952_v53 = vrot.slane %v1951_v36, 4  ;;  %v1973_v55 = vadd.f32 %v1972_v52, %v1966_v35 }
 0x203   : > { %v1953_v13 = vadd.f32 %v1952_v53, %v1951_v36  ;;  %v1974_v63 = vrot.slane %v1973_v55, 4 }
 0x205   : > { %v1954_v17 = vrot.slane %v1953_v13, 2  ;;  %v1975_v28 = vadd.f32 %v1974_v63, %v1973_v55 }
 0x207   : > { %v1955_v59 = vadd.f32 %v1954_v17, %v1953_v13  ;;  %v1976_v1 = vrot.slane %v1975_v28, 2 }
 0x209   : > { %v1956_v21 = vrot.slane %v1955_v59, 1  ;;  %v1977_v25 = vadd.f32 %v1976_v1, %v1975_v28 }
 0x20b   : > { %v1957_v37 = vadd.f32 %v1956_v21, %v1955_v59  ;;  %v1978_v54 = vrot.slane %v1977_v25, 1 }
 0x20d   : > { %1958 = vst [vmem:[%s292_s12] sm:$0x1] %v1957_v37  ;;  %v1979_v5 = vadd.f32 %v1978_v54, %v1977_v25 }
 0x20f   : > { %1980 = vst [vmem:[%s295_s15] sm:$0x1] %v1979_v5 }
 0x210 PF: > { %s18_s24 = sadd.s32 1, %s2832_s24  }
 0x211   : > { %p15_p4 = scmp.ge.s32.totalorder %s18_s24, 4  }
 0x213   :  { %17 = sbr.rel (!%p15_p4) target bundleno = 1 (0x1), region = 102 }

</bundles_post_ra>
